<compile_context>
chip_gen: v5e
topology: v5e:2x2
jax: 0.10.0
libtpu: 0.0.40
codegen_flags: <defaults>
</compile_context>

<pallas_src>
import math

import jax
import jax.numpy as jnp
from jax.experimental import pallas as pl
from jax.experimental.pallas import tpu as pltpu

# ---- model dims (small, consistent with the module's forward) --------------
B = 2            # batch
S = 8            # sequence length
T = B * S        # folded batch*seq rows
H = 32           # args.dim_size / hidden size
NH = 2           # attention heads
HD = H // NH     # head dim
FFN = 64         # intermediate FFN size
NLAYERS = 2
VOCAB = 50
NTYPES = 2
EMB_ROWS = VOCAB + NTYPES + S   # combined [word | type | pos] table rows
EPS = 1e-12      # BERT LayerNorm eps
NEG = -1e9       # additive attention mask value


def _layernorm(x, gamma, beta):
    mean = jnp.mean(x, axis=-1, keepdims=True)
    var = jnp.mean((x - mean) ** 2, axis=-1, keepdims=True)
    return (x - mean) * jax.lax.rsqrt(var + EPS) * gamma + beta


# ---------------------------------------------------------------------------
# Single fused kernel: embeddings -> LayerNorm -> NLAYERS encoder layers -> score head
# ---------------------------------------------------------------------------
def fused_plm_kernel(ids_ref, mask_ref, tbl_ref, embln_ref,
                     wqkv_ref, bqkv_ref, wo_ref,
                     w1_ref, b1_ref, w2_ref, vec_ref,
                     sw_ref, sb_ref, o_ref, ctx_sc):
    # ids   : (T, 3) i32      [word_id, VOCAB+type_id, VOCAB+NTYPES+pos] (disjoint ranges)
    # mask  : (B, S) f32      1 = valid token, 0 = padding
    # tbl   : (EMB_ROWS, H) f32 combined embedding table
    # embln : (2, H) f32      [gamma; beta]
    # wqkv  : (L, H, 3H) bf16 Q|K|V packed along columns, Q pre-scaled by 1/sqrt(HD)
    # bqkv  : (L, 1, 3H) f32
    # wo    : (L, H, H) bf16 ; w1 (L,H,FFN)/w2 (L,FFN,H) bf16 ; b1 (L,1,FFN) f32
    # vec   : (L, 6, H) f32   rows = [ln1_g, ln1_b, ln2_g, ln2_b, bo, b2]
    # sw/sb : (1, H) f32 VMEM / (1, 1) f32 SMEM     score head
    # ctx_sc: (T, H) f32 VMEM scratch for per-head context assembly

    # ---- in-kernel embedding lookup: multi-hot (T,E) @ table (E,H) on the MXU
    ids = ids_ref[...]                                             # (T, 3) i32
    lane = jax.lax.broadcasted_iota(jnp.int32, (T, EMB_ROWS), 1)
    mh = ((lane == ids[:, 0:1]) | (lane == ids[:, 1:2]) | (lane == ids[:, 2:3]))
    emb = jnp.dot(mh.astype(jnp.float32), tbl_ref[...],
                  preferred_element_type=jnp.float32)              # (T, H) f32
    x = _layernorm(emb, embln_ref[0:1, :], embln_ref[1:2, :])

    neg = (1.0 - mask_ref[...]) * NEG                              # (B, S) f32, hoisted

    for l in range(NLAYERS):                                       # static unrolled layers
        vec = vec_ref[l]                                           # (6, H) f32
        ln1_g, ln1_b = vec[0:1, :], vec[1:2, :]
        ln2_g, ln2_b = vec[2:3, :], vec[3:4, :]
        bo, b2 = vec[4:5, :], vec[5:6, :]

        # ---- fused Q/K/V projection: ONE (T,H)@(H,3H) matmul (scale pre-folded into Q)
        qkv = jnp.dot(x.astype(jnp.bfloat16), wqkv_ref[l],
                      preferred_element_type=jnp.float32) + bqkv_ref[l]   # (T, 3H) f32

        # ---- self-attention: static (b,h) loops of 2-D dots; context assembled in VMEM
        #      scratch via static-slice stores (no broadcasts / concats / transposes).
        for b in range(B):
            neg_b = neg[b:b + 1, :]                                # (1, S)
            for h in range(NH):
                q = qkv[b * S:(b + 1) * S, h * HD:(h + 1) * HD].astype(jnp.bfloat16)
                k = qkv[b * S:(b + 1) * S, (NH + h) * HD:(NH + h + 1) * HD].astype(jnp.bfloat16)
                v = qkv[b * S:(b + 1) * S, (2 * NH + h) * HD:(2 * NH + h + 1) * HD].astype(jnp.bfloat16)
                sc = jax.lax.dot_general(q, k, (((1,), (1,)), ((), ())),
                                         preferred_element_type=jnp.float32)   # (S, S)
                sc = sc + neg_b
                sc = sc - jnp.max(sc, axis=-1, keepdims=True)
                p = jnp.exp(sc)
                p = p / jnp.sum(p, axis=-1, keepdims=True)         # exact softmax (f32)
                ctx_sc[b * S:(b + 1) * S, h * HD:(h + 1) * HD] = jnp.dot(
                    p.astype(jnp.bfloat16), v, preferred_element_type=jnp.float32)

        # ---- output projection: ONE (T,H)@(H,H) matmul over the assembled context
        attn = jnp.dot(ctx_sc[...].astype(jnp.bfloat16), wo_ref[l],
                       preferred_element_type=jnp.float32) + bo    # (T, H)
        h1 = _layernorm(x + attn, ln1_g, ln1_b)

        # ---- FFN  # TODO(synk): HF BERT uses exact erf GELU; tanh approx used here
        ff = jnp.dot(h1.astype(jnp.bfloat16), w1_ref[l],
                     preferred_element_type=jnp.float32) + b1_ref[l]
        ff = jax.nn.gelu(ff, approximate=True)
        ff = jnp.dot(ff.astype(jnp.bfloat16), w2_ref[l],
                     preferred_element_type=jnp.float32) + b2
        x = _layernorm(h1 + ff, ln2_g, ln2_b)

    # ---- score head: tanh(score_proj(cls)) as f32 VPU mul + lane reduce, (1, B) output
    sw = sw_ref[...]                                               # (1, H)
    scores = jnp.concatenate(
        [jnp.sum(x[b * S:b * S + 1, :] * sw, axis=-1, keepdims=True) for b in range(B)],
        axis=1) + sb_ref[0, 0]                                     # (1, B)
    o_ref[...] = jnp.tanh(scores)


# ---------------------------------------------------------------------------
# Parameter init (deterministic, synthetic) in the packed/stacked layout
# ---------------------------------------------------------------------------
def init_params(key):
    def nrm(k, shape):
        return (0.02 * jax.random.normal(k, shape)).astype(jnp.float32)

    keys = iter(jax.random.split(key, 4 + NLAYERS * 6))
    word_emb = nrm(next(keys), (VOCAB, H))
    pos_emb = nrm(next(keys), (S, H))
    type_emb = nrm(next(keys), (NTYPES, H))
    score_w = nrm(next(keys), (1, H))

    scale = 1.0 / math.sqrt(HD)
    wqkv_l, wo_l, w1_l, w2_l = [], [], [], []
    for _ in range(NLAYERS):
        wq, wk, wv = nrm(next(keys), (H, H)), nrm(next(keys), (H, H)), nrm(next(keys), (H, H))
        wo = nrm(next(keys), (H, H))
        w1, w2 = nrm(next(keys), (H, FFN)), nrm(next(keys), (FFN, H))
        # pack Q|K|V along columns; fold 1/sqrt(HD) into the Q block (weights + bias)
        wqkv_l.append(jnp.concatenate([wq * scale, wk, wv], axis=1))   # (H, 3H)
        wo_l.append(wo)
        w1_l.append(w1)
        w2_l.append(w2)

    vec_one_layer = jnp.stack([jnp.ones(H), jnp.zeros(H),    # ln1 gamma/beta
                               jnp.ones(H), jnp.zeros(H),    # ln2 gamma/beta
                               jnp.zeros(H), jnp.zeros(H)])  # bo, b2
    return {
        # combined embedding table: rows [0,VOCAB) words, [VOCAB,VOCAB+NTYPES) types, rest positions
        "emb_tbl": jnp.concatenate([word_emb, type_emb, pos_emb], axis=0),   # (EMB_ROWS, H) f32
        "emb_ln": jnp.concatenate([jnp.ones((1, H)), jnp.zeros((1, H))],
                                  axis=0).astype(jnp.float32),               # (2, H)
        "wqkv": jnp.stack(wqkv_l).astype(jnp.bfloat16),                      # (L, H, 3H)
        "bqkv": jnp.zeros((NLAYERS, 1, 3 * H), jnp.float32),                 # Q-part would be pre-scaled too
        "wo": jnp.stack(wo_l).astype(jnp.bfloat16),                          # (L, H, H)
        "w1": jnp.stack(w1_l).astype(jnp.bfloat16),                          # (L, H, FFN)
        "b1": jnp.zeros((NLAYERS, 1, FFN), jnp.float32),
        "w2": jnp.stack(w2_l).astype(jnp.bfloat16),                          # (L, FFN, H)
        "vec": jnp.tile(vec_one_layer[None], (NLAYERS, 1, 1)).astype(jnp.float32),
        "score_w": score_w,                                                  # (1, H)
        "score_b": jnp.zeros((1, 1), jnp.float32),
    }


# ---------------------------------------------------------------------------
# Forward wrapper: pack integer ids, then ONE pallas_call for the whole forward
# ---------------------------------------------------------------------------
def plm_rerank_forward(params, token_ids, segment_ids, token_mask,
                       query_lens=None, doc_lens=None):
    # query_lens / doc_lens accepted but unused, as in the PyTorch forward.
    # TODO(synk): dropout omitted (inference / eval semantics).
    positions = jnp.arange(S, dtype=jnp.int32)
    ids = jnp.stack(
        [token_ids.reshape(T),
         VOCAB + segment_ids.reshape(T),
         VOCAB + NTYPES + jnp.tile(positions, (B,))],
        axis=1).astype(jnp.int32)                                   # (T, 3)
    mask_f32 = token_mask.astype(jnp.float32).reshape(B, S)

    operands = (ids, mask_f32, params["emb_tbl"], params["emb_ln"],
                params["wqkv"], params["bqkv"], params["wo"],
                params["w1"], params["b1"], params["w2"], params["vec"],
                params["score_w"], params["score_b"])

    flops = (2 * T * EMB_ROWS * H
             + NLAYERS * (2 * T * H * (3 * H)            # QKV projection
                          + B * NH * 2 * (2 * S * S * HD)  # scores + PV
                          + 2 * T * H * H                # output projection
                          + 2 * (2 * T * H * FFN)))      # FFN
    transcendentals = NLAYERS * (B * NH * S * S + T * FFN) + (2 * NLAYERS + 1) * T + B
    bytes_accessed = sum(int(a.size) * a.dtype.itemsize for a in operands) + B * 4

    vmem = pltpu.MemorySpace.VMEM
    smem = pltpu.MemorySpace.SMEM
    out = pl.pallas_call(
        fused_plm_kernel,
        out_shape=jax.ShapeDtypeStruct((1, B), jnp.float32),        # lane-packed score row
        in_specs=[pl.BlockSpec(memory_space=vmem)] * 12
                 + [pl.BlockSpec(memory_space=smem)],               # (1,1) score bias
        out_specs=pl.BlockSpec(memory_space=vmem),
        scratch_shapes=[pltpu.VMEM((T, H), jnp.float32)],           # per-head ctx assembly
        compiler_params=pltpu.CompilerParams(vmem_limit_bytes=8 * 1024 * 1024),
        cost_estimate=pl.CostEstimate(flops=flops,
                                      transcendentals=transcendentals,
                                      bytes_accessed=bytes_accessed),
    )(*operands)
    return out.reshape(B, 1)                                        # module semantics: (B, 1)


# ---------------------------------------------------------------------------
# Pure-JAX reference (f32, same packed params) for a correctness sanity check
# ---------------------------------------------------------------------------
def plm_rerank_reference(params, token_ids, segment_ids, token_mask):
    tbl = params["emb_tbl"]
    positions = jnp.arange(S, dtype=jnp.int32)
    emb = (tbl[token_ids] + tbl[VOCAB + segment_ids]
           + tbl[VOCAB + NTYPES + positions][None, :, :]).reshape(T, H)
    x = _layernorm(emb, params["emb_ln"][0:1], params["emb_ln"][1:2])
    neg = (1.0 - token_mask.astype(jnp.float32)) * NEG               # (B, S)
    for l in range(NLAYERS):
        vec = params["vec"][l]
        ln1_g, ln1_b, ln2_g, ln2_b, bo, b2 = [vec[i:i + 1] for i in range(6)]
        qkv = x @ params["wqkv"][l].astype(jnp.float32) + params["bqkv"][l]   # (T, 3H)
        q = qkv[:, 0:H].reshape(B, S, NH, HD).transpose(0, 2, 1, 3)
        k = qkv[:, H:2 * H].reshape(B, S, NH, HD).transpose(0, 2, 1, 3)
        v = qkv[:, 2 * H:].reshape(B, S, NH, HD).transpose(0, 2, 1, 3)
        sc = jnp.einsum('bhqd,bhkd->bhqk', q, k) + neg[:, None, None, :]      # scale folded in wqkv
        p = jax.nn.softmax(sc, axis=-1)
        ctx = jnp.einsum('bhqk,bhkd->bhqd', p, v).transpose(0, 2, 1, 3).reshape(T, H)
        attn = ctx @ params["wo"][l].astype(jnp.float32) + bo
        h1 = _layernorm(x + attn, ln1_g, ln1_b)
        ff = jax.nn.gelu(h1 @ params["w1"][l].astype(jnp.float32) + params["b1"][l],
                         approximate=True)
        ff = ff @ params["w2"][l].astype(jnp.float32) + b2
        x = _layernorm(h1 + ff, ln2_g, ln2_b)
    cls = x.reshape(B, S, H)[:, 0, :]
    return jnp.tanh(jnp.sum(cls * params["score_w"], axis=-1, keepdims=True)
                    + params["score_b"])


if __name__ == "__main__":
    key = jax.random.PRNGKey(0)
    pkey, ikey, skey = jax.random.split(key, 3)

    params = init_params(pkey)

    token_ids = jax.random.randint(ikey, (B, S), 0, VOCAB, dtype=jnp.int32)
    segment_ids = jax.random.randint(skey, (B, S), 0, NTYPES, dtype=jnp.int32)
    # last two tokens of batch element 1 are padding
    token_mask = jnp.array([[1] * S, [1] * (S - 2) + [0, 0]], dtype=jnp.int32)
    query_lens = jnp.array([3, 2], dtype=jnp.int32)
    doc_lens = jnp.array([5, 4], dtype=jnp.int32)

    fwd = jax.jit(plm_rerank_forward)
    scores = jax.block_until_ready(
        fwd(params, token_ids, segment_ids, token_mask, query_lens, doc_lens))
    assert scores.shape == (B, 1) and scores.dtype == jnp.float32

    ref = plm_rerank_reference(params, token_ids, segment_ids, token_mask)
    max_err = float(jnp.max(jnp.abs(scores - ref)))
    assert max_err < 1e-2, f"kernel/reference mismatch: {max_err}"

    print("KERNEL_OK")
</pallas_src>

<mosaic_0001>
module attributes {stable_mosaic.version = 11 : i64} {
  func.func @fused_plm_kernel(%arg0: memref<16x3xi32, #tpu.memory_space<vmem>>, %arg1: memref<2x8xf32, #tpu.memory_space<vmem>>, %arg2: memref<60x32xf32, #tpu.memory_space<vmem>>, %arg3: memref<2x32xf32, #tpu.memory_space<vmem>>, %arg4: memref<2x32x96xbf16, #tpu.memory_space<vmem>>, %arg5: memref<2x1x96xf32, #tpu.memory_space<vmem>>, %arg6: memref<2x32x32xbf16, #tpu.memory_space<vmem>>, %arg7: memref<2x32x64xbf16, #tpu.memory_space<vmem>>, %arg8: memref<2x1x64xf32, #tpu.memory_space<vmem>>, %arg9: memref<2x64x32xbf16, #tpu.memory_space<vmem>>, %arg10: memref<2x6x32xf32, #tpu.memory_space<vmem>>, %arg11: memref<1x32xf32, #tpu.memory_space<vmem>>, %arg12: memref<1x1xf32, #tpu.memory_space<smem>>, %arg13: memref<1x2xf32, #tpu.memory_space<vmem>>, %arg14: memref<16x32xf32, #tpu.memory_space<vmem>>) attributes {dimension_semantics = [], scalar_prefetch = 0 : i64, scratch_operands = 1 : i64, tpu.core_type = #tpu.core_type<tc>} {
    %c0 = arith.constant 0 : index
    %c0_0 = arith.constant 0 : index
    %0 = vector.load %arg0[%c0, %c0_0] : memref<16x3xi32, #tpu.memory_space<vmem>>, vector<16x3xi32>
    %1 = tpu.iota {dimensions = array<i32: 1>} : vector<16x60xi32>
    %2 = vector.extract_strided_slice %0 {offsets = [0, 0], sizes = [16, 1], strides = [1, 1]} : vector<16x3xi32> to vector<16x1xi32>
    %3 = vector.broadcast %2 : vector<16x1xi32> to vector<16x60xi32>
    %4 = arith.cmpi eq, %1, %3 : vector<16x60xi32>
    %5 = vector.extract_strided_slice %0 {offsets = [0, 1], sizes = [16, 1], strides = [1, 1]} : vector<16x3xi32> to vector<16x1xi32>
    %6 = vector.broadcast %5 : vector<16x1xi32> to vector<16x60xi32>
    %7 = arith.cmpi eq, %1, %6 : vector<16x60xi32>
    %8 = arith.ori %4, %7 : vector<16x60xi1>
    %9 = vector.extract_strided_slice %0 {offsets = [0, 2], sizes = [16, 1], strides = [1, 1]} : vector<16x3xi32> to vector<16x1xi32>
    %10 = vector.broadcast %9 : vector<16x1xi32> to vector<16x60xi32>
    %11 = arith.cmpi eq, %1, %10 : vector<16x60xi32>
    %12 = arith.ori %8, %11 : vector<16x60xi1>
    %13 = arith.extui %12 : vector<16x60xi1> to vector<16x60xi32>
    %14 = arith.sitofp %13 : vector<16x60xi32> to vector<16x60xf32>
    %c0_1 = arith.constant 0 : index
    %c0_2 = arith.constant 0 : index
    %15 = vector.load %arg2[%c0_1, %c0_2] : memref<60x32xf32, #tpu.memory_space<vmem>>, vector<60x32xf32>
    %cst = arith.constant dense<0.000000e+00> : vector<16x32xf32>
    %16 = tpu.matmul %14, %15, %cst {dimension_numbers = #tpu.dot_dimension_numbers<[1], [0], [0], [1], [0, 0, 1, 1], [], []>} : vector<16x60xf32>, vector<60x32xf32>, vector<16x32xf32> -> vector<16x32xf32>
    %c0_3 = arith.constant 0 : index
    %c0_4 = arith.constant 0 : index
    %17 = vector.load %arg3[%c0_3, %c0_4] : memref<2x32xf32, #tpu.memory_space<vmem>>, vector<1x32xf32>
    %c1 = arith.constant 1 : index
    %c0_5 = arith.constant 0 : index
    %18 = vector.load %arg3[%c1, %c0_5] : memref<2x32xf32, #tpu.memory_space<vmem>>, vector<1x32xf32>
    %cst_6 = arith.constant dense<0.000000e+00> : vector<16xf32>
    %19 = vector.multi_reduction <add>, %16, %cst_6 [1] : vector<16x32xf32> to vector<16xf32>
    %20 = vector.shape_cast %19 : vector<16xf32> to vector<16x1xf32>
    %cst_7 = arith.constant 3.200000e+01 : f32
    %21 = vector.broadcast %cst_7 : f32 to vector<16x1xf32>
    %22 = arith.divf %20, %21 : vector<16x1xf32>
    %23 = vector.broadcast %22 : vector<16x1xf32> to vector<16x32xf32>
    %24 = arith.subf %16, %23 : vector<16x32xf32>
    %25 = arith.mulf %24, %24 : vector<16x32xf32>
    %cst_8 = arith.constant dense<0.000000e+00> : vector<16xf32>
    %26 = vector.multi_reduction <add>, %25, %cst_8 [1] : vector<16x32xf32> to vector<16xf32>
    %27 = vector.shape_cast %26 : vector<16xf32> to vector<16x1xf32>
    %cst_9 = arith.constant 3.200000e+01 : f32
    %28 = vector.broadcast %cst_9 : f32 to vector<16x1xf32>
    %29 = arith.divf %27, %28 : vector<16x1xf32>
    %30 = vector.broadcast %22 : vector<16x1xf32> to vector<16x32xf32>
    %31 = arith.subf %16, %30 : vector<16x32xf32>
    %cst_10 = arith.constant 9.99999996E-13 : f32
    %32 = vector.broadcast %cst_10 : f32 to vector<16x1xf32>
    %33 = arith.addf %29, %32 : vector<16x1xf32>
    %34 = math.rsqrt %33 : vector<16x1xf32>
    %35 = vector.broadcast %34 : vector<16x1xf32> to vector<16x32xf32>
    %36 = arith.mulf %31, %35 : vector<16x32xf32>
    %37 = vector.broadcast %17 : vector<1x32xf32> to vector<16x32xf32>
    %38 = arith.mulf %36, %37 : vector<16x32xf32>
    %39 = vector.broadcast %18 : vector<1x32xf32> to vector<16x32xf32>
    %40 = arith.addf %38, %39 : vector<16x32xf32>
    %c0_11 = arith.constant 0 : index
    %c0_12 = arith.constant 0 : index
    %41 = vector.load %arg1[%c0_11, %c0_12] : memref<2x8xf32, #tpu.memory_space<vmem>>, vector<2x8xf32>
    %cst_13 = arith.constant 1.000000e+00 : f32
    %42 = vector.broadcast %cst_13 : f32 to vector<2x8xf32>
    %43 = arith.subf %42, %41 : vector<2x8xf32>
    %cst_14 = arith.constant -1.000000e+09 : f32
    %44 = vector.broadcast %cst_14 : f32 to vector<2x8xf32>
    %45 = arith.mulf %43, %44 : vector<2x8xf32>
    %c0_15 = arith.constant 0 : index
    %c0_16 = arith.constant 0 : index
    %c0_17 = arith.constant 0 : index
    %46 = vector.load %arg10[%c0_15, %c0_16, %c0_17] : memref<2x6x32xf32, #tpu.memory_space<vmem>>, vector<1x6x32xf32>
    %47 = vector.shape_cast %46 : vector<1x6x32xf32> to vector<6x32xf32>
    %48 = vector.extract_strided_slice %47 {offsets = [0, 0], sizes = [1, 32], strides = [1, 1]} : vector<6x32xf32> to vector<1x32xf32>
    %49 = vector.extract_strided_slice %47 {offsets = [1, 0], sizes = [1, 32], strides = [1, 1]} : vector<6x32xf32> to vector<1x32xf32>
    %50 = vector.extract_strided_slice %47 {offsets = [2, 0], sizes = [1, 32], strides = [1, 1]} : vector<6x32xf32> to vector<1x32xf32>
    %51 = vector.extract_strided_slice %47 {offsets = [3, 0], sizes = [1, 32], strides = [1, 1]} : vector<6x32xf32> to vector<1x32xf32>
    %52 = vector.extract_strided_slice %47 {offsets = [4, 0], sizes = [1, 32], strides = [1, 1]} : vector<6x32xf32> to vector<1x32xf32>
    %53 = vector.extract_strided_slice %47 {offsets = [5, 0], sizes = [1, 32], strides = [1, 1]} : vector<6x32xf32> to vector<1x32xf32>
    %54 = arith.truncf %40 : vector<16x32xf32> to vector<16x32xbf16>
    %c0_18 = arith.constant 0 : index
    %c0_19 = arith.constant 0 : index
    %c0_20 = arith.constant 0 : index
    %55 = vector.load %arg4[%c0_18, %c0_19, %c0_20] : memref<2x32x96xbf16, #tpu.memory_space<vmem>>, vector<1x32x96xbf16>
    %56 = vector.shape_cast %55 : vector<1x32x96xbf16> to vector<32x96xbf16>
    %cst_21 = arith.constant dense<0.000000e+00> : vector<16x96xf32>
    %57 = tpu.matmul %54, %56, %cst_21 {dimension_numbers = #tpu.dot_dimension_numbers<[1], [0], [0], [1], [0, 0, 1, 1], [], []>} : vector<16x32xbf16>, vector<32x96xbf16>, vector<16x96xf32> -> vector<16x96xf32>
    %c0_22 = arith.constant 0 : index
    %c0_23 = arith.constant 0 : index
    %c0_24 = arith.constant 0 : index
    %58 = vector.load %arg5[%c0_22, %c0_23, %c0_24] : memref<2x1x96xf32, #tpu.memory_space<vmem>>, vector<1x1x96xf32>
    %59 = vector.shape_cast %58 : vector<1x1x96xf32> to vector<1x96xf32>
    %60 = vector.broadcast %59 : vector<1x96xf32> to vector<16x96xf32>
    %61 = arith.addf %57, %60 : vector<16x96xf32>
    %62 = vector.extract_strided_slice %45 {offsets = [0, 0], sizes = [1, 8], strides = [1, 1]} : vector<2x8xf32> to vector<1x8xf32>
    %63 = vector.extract_strided_slice %61 {offsets = [0, 0], sizes = [8, 16], strides = [1, 1]} : vector<16x96xf32> to vector<8x16xf32>
    %64 = arith.truncf %63 : vector<8x16xf32> to vector<8x16xbf16>
    %65 = vector.extract_strided_slice %61 {offsets = [0, 32], sizes = [8, 16], strides = [1, 1]} : vector<16x96xf32> to vector<8x16xf32>
    %66 = arith.truncf %65 : vector<8x16xf32> to vector<8x16xbf16>
    %67 = vector.extract_strided_slice %61 {offsets = [0, 64], sizes = [8, 16], strides = [1, 1]} : vector<16x96xf32> to vector<8x16xf32>
    %68 = arith.truncf %67 : vector<8x16xf32> to vector<8x16xbf16>
    %cst_25 = arith.constant dense<0.000000e+00> : vector<8x8xf32>
    %69 = tpu.matmul %64, %66, %cst_25 {dimension_numbers = #tpu.dot_dimension_numbers<[1], [1], [0], [0], [0, 0, 1, 0], [], []>} : vector<8x16xbf16>, vector<8x16xbf16>, vector<8x8xf32> -> vector<8x8xf32>
    %70 = vector.broadcast %62 : vector<1x8xf32> to vector<8x8xf32>
    %71 = arith.addf %69, %70 : vector<8x8xf32>
    %cst_26 = arith.constant dense<0xFF800000> : vector<8xf32>
    %72 = vector.multi_reduction <maximumf>, %71, %cst_26 [1] : vector<8x8xf32> to vector<8xf32>
    %73 = vector.shape_cast %72 : vector<8xf32> to vector<8x1xf32>
    %74 = vector.broadcast %73 : vector<8x1xf32> to vector<8x8xf32>
    %75 = arith.subf %71, %74 : vector<8x8xf32>
    %76 = math.exp %75 : vector<8x8xf32>
    %cst_27 = arith.constant dense<0.000000e+00> : vector<8xf32>
    %77 = vector.multi_reduction <add>, %76, %cst_27 [1] : vector<8x8xf32> to vector<8xf32>
    %78 = vector.shape_cast %77 : vector<8xf32> to vector<8x1xf32>
    %79 = vector.broadcast %78 : vector<8x1xf32> to vector<8x8xf32>
    %80 = arith.divf %76, %79 : vector<8x8xf32>
    %81 = arith.truncf %80 : vector<8x8xf32> to vector<8x8xbf16>
    %cst_28 = arith.constant dense<0.000000e+00> : vector<8x16xf32>
    %82 = tpu.matmul %81, %68, %cst_28 {dimension_numbers = #tpu.dot_dimension_numbers<[1], [0], [0], [1], [0, 0, 1, 1], [], []>} : vector<8x8xbf16>, vector<8x16xbf16>, vector<8x16xf32> -> vector<8x16xf32>
    %c0_29 = arith.constant 0 : index
    %c0_30 = arith.constant 0 : index
    %83 = vector.load %arg14[%c0_29, %c0_30] : memref<16x32xf32, #tpu.memory_space<vmem>>, vector<8x16xf32>
    tpu.vector_store %arg14[%c0_29, %c0_30], %82 {strides = array<i32>} : memref<16x32xf32, #tpu.memory_space<vmem>>, vector<8x16xf32>,
    %84 = vector.extract_strided_slice %61 {offsets = [0, 16], sizes = [8, 16], strides = [1, 1]} : vector<16x96xf32> to vector<8x16xf32>
    %85 = arith.truncf %84 : vector<8x16xf32> to vector<8x16xbf16>
    %86 = vector.extract_strided_slice %61 {offsets = [0, 48], sizes = [8, 16], strides = [1, 1]} : vector<16x96xf32> to vector<8x16xf32>
    %87 = arith.truncf %86 : vector<8x16xf32> to vector<8x16xbf16>
    %88 = vector.extract_strided_slice %61 {offsets = [0, 80], sizes = [8, 16], strides = [1, 1]} : vector<16x96xf32> to vector<8x16xf32>
    %89 = arith.truncf %88 : vector<8x16xf32> to vector<8x16xbf16>
    %cst_31 = arith.constant dense<0.000000e+00> : vector<8x8xf32>
    %90 = tpu.matmul %85, %87, %cst_31 {dimension_numbers = #tpu.dot_dimension_numbers<[1], [1], [0], [0], [0, 0, 1, 0], [], []>} : vector<8x16xbf16>, vector<8x16xbf16>, vector<8x8xf32> -> vector<8x8xf32>
    %91 = vector.broadcast %62 : vector<1x8xf32> to vector<8x8xf32>
    %92 = arith.addf %90, %91 : vector<8x8xf32>
    %cst_32 = arith.constant dense<0xFF800000> : vector<8xf32>
    %93 = vector.multi_reduction <maximumf>, %92, %cst_32 [1] : vector<8x8xf32> to vector<8xf32>
    %94 = vector.shape_cast %93 : vector<8xf32> to vector<8x1xf32>
    %95 = vector.broadcast %94 : vector<8x1xf32> to vector<8x8xf32>
    %96 = arith.subf %92, %95 : vector<8x8xf32>
    %97 = math.exp %96 : vector<8x8xf32>
    %cst_33 = arith.constant dense<0.000000e+00> : vector<8xf32>
    %98 = vector.multi_reduction <add>, %97, %cst_33 [1] : vector<8x8xf32> to vector<8xf32>
    %99 = vector.shape_cast %98 : vector<8xf32> to vector<8x1xf32>
    %100 = vector.broadcast %99 : vector<8x1xf32> to vector<8x8xf32>
    %101 = arith.divf %97, %100 : vector<8x8xf32>
    %102 = arith.truncf %101 : vector<8x8xf32> to vector<8x8xbf16>
    %cst_34 = arith.constant dense<0.000000e+00> : vector<8x16xf32>
    %103 = tpu.matmul %102, %89, %cst_34 {dimension_numbers = #tpu.dot_dimension_numbers<[1], [0], [0], [1], [0, 0, 1, 1], [], []>} : vector<8x8xbf16>, vector<8x16xbf16>, vector<8x16xf32> -> vector<8x16xf32>
    %c0_35 = arith.constant 0 : index
    %c16 = arith.constant 16 : index
    %104 = vector.load %arg14[%c0_35, %c16] : memref<16x32xf32, #tpu.memory_space<vmem>>, vector<8x16xf32>
    tpu.vector_store %arg14[%c0_35, %c16], %103 {strides = array<i32>} : memref<16x32xf32, #tpu.memory_space<vmem>>, vector<8x16xf32>,
    %105 = vector.extract_strided_slice %45 {offsets = [1, 0], sizes = [1, 8], strides = [1, 1]} : vector<2x8xf32> to vector<1x8xf32>
    %106 = vector.extract_strided_slice %61 {offsets = [8, 0], sizes = [8, 16], strides = [1, 1]} : vector<16x96xf32> to vector<8x16xf32>
    %107 = arith.truncf %106 : vector<8x16xf32> to vector<8x16xbf16>
    %108 = vector.extract_strided_slice %61 {offsets = [8, 32], sizes = [8, 16], strides = [1, 1]} : vector<16x96xf32> to vector<8x16xf32>
    %109 = arith.truncf %108 : vector<8x16xf32> to vector<8x16xbf16>
    %110 = vector.extract_strided_slice %61 {offsets = [8, 64], sizes = [8, 16], strides = [1, 1]} : vector<16x96xf32> to vector<8x16xf32>
    %111 = arith.truncf %110 : vector<8x16xf32> to vector<8x16xbf16>
    %cst_36 = arith.constant dense<0.000000e+00> : vector<8x8xf32>
    %112 = tpu.matmul %107, %109, %cst_36 {dimension_numbers = #tpu.dot_dimension_numbers<[1], [1], [0], [0], [0, 0, 1, 0], [], []>} : vector<8x16xbf16>, vector<8x16xbf16>, vector<8x8xf32> -> vector<8x8xf32>
    %113 = vector.broadcast %105 : vector<1x8xf32> to vector<8x8xf32>
    %114 = arith.addf %112, %113 : vector<8x8xf32>
    %cst_37 = arith.constant dense<0xFF800000> : vector<8xf32>
    %115 = vector.multi_reduction <maximumf>, %114, %cst_37 [1] : vector<8x8xf32> to vector<8xf32>
    %116 = vector.shape_cast %115 : vector<8xf32> to vector<8x1xf32>
    %117 = vector.broadcast %116 : vector<8x1xf32> to vector<8x8xf32>
    %118 = arith.subf %114, %117 : vector<8x8xf32>
    %119 = math.exp %118 : vector<8x8xf32>
    %cst_38 = arith.constant dense<0.000000e+00> : vector<8xf32>
    %120 = vector.multi_reduction <add>, %119, %cst_38 [1] : vector<8x8xf32> to vector<8xf32>
    %121 = vector.shape_cast %120 : vector<8xf32> to vector<8x1xf32>
    %122 = vector.broadcast %121 : vector<8x1xf32> to vector<8x8xf32>
    %123 = arith.divf %119, %122 : vector<8x8xf32>
    %124 = arith.truncf %123 : vector<8x8xf32> to vector<8x8xbf16>
    %cst_39 = arith.constant dense<0.000000e+00> : vector<8x16xf32>
    %125 = tpu.matmul %124, %111, %cst_39 {dimension_numbers = #tpu.dot_dimension_numbers<[1], [0], [0], [1], [0, 0, 1, 1], [], []>} : vector<8x8xbf16>, vector<8x16xbf16>, vector<8x16xf32> -> vector<8x16xf32>
    %c8 = arith.constant 8 : index
    %c0_40 = arith.constant 0 : index
    %126 = vector.load %arg14[%c8, %c0_40] : memref<16x32xf32, #tpu.memory_space<vmem>>, vector<8x16xf32>
    tpu.vector_store %arg14[%c8, %c0_40], %125 {strides = array<i32>} : memref<16x32xf32, #tpu.memory_space<vmem>>, vector<8x16xf32>,
    %127 = vector.extract_strided_slice %61 {offsets = [8, 16], sizes = [8, 16], strides = [1, 1]} : vector<16x96xf32> to vector<8x16xf32>
    %128 = arith.truncf %127 : vector<8x16xf32> to vector<8x16xbf16>
    %129 = vector.extract_strided_slice %61 {offsets = [8, 48], sizes = [8, 16], strides = [1, 1]} : vector<16x96xf32> to vector<8x16xf32>
    %130 = arith.truncf %129 : vector<8x16xf32> to vector<8x16xbf16>
    %131 = vector.extract_strided_slice %61 {offsets = [8, 80], sizes = [8, 16], strides = [1, 1]} : vector<16x96xf32> to vector<8x16xf32>
    %132 = arith.truncf %131 : vector<8x16xf32> to vector<8x16xbf16>
    %cst_41 = arith.constant dense<0.000000e+00> : vector<8x8xf32>
    %133 = tpu.matmul %128, %130, %cst_41 {dimension_numbers = #tpu.dot_dimension_numbers<[1], [1], [0], [0], [0, 0, 1, 0], [], []>} : vector<8x16xbf16>, vector<8x16xbf16>, vector<8x8xf32> -> vector<8x8xf32>
    %134 = vector.broadcast %105 : vector<1x8xf32> to vector<8x8xf32>
    %135 = arith.addf %133, %134 : vector<8x8xf32>
    %cst_42 = arith.constant dense<0xFF800000> : vector<8xf32>
    %136 = vector.multi_reduction <maximumf>, %135, %cst_42 [1] : vector<8x8xf32> to vector<8xf32>
    %137 = vector.shape_cast %136 : vector<8xf32> to vector<8x1xf32>
    %138 = vector.broadcast %137 : vector<8x1xf32> to vector<8x8xf32>
    %139 = arith.subf %135, %138 : vector<8x8xf32>
    %140 = math.exp %139 : vector<8x8xf32>
    %cst_43 = arith.constant dense<0.000000e+00> : vector<8xf32>
    %141 = vector.multi_reduction <add>, %140, %cst_43 [1] : vector<8x8xf32> to vector<8xf32>
    %142 = vector.shape_cast %141 : vector<8xf32> to vector<8x1xf32>
    %143 = vector.broadcast %142 : vector<8x1xf32> to vector<8x8xf32>
    %144 = arith.divf %140, %143 : vector<8x8xf32>
    %145 = arith.truncf %144 : vector<8x8xf32> to vector<8x8xbf16>
    %cst_44 = arith.constant dense<0.000000e+00> : vector<8x16xf32>
    %146 = tpu.matmul %145, %132, %cst_44 {dimension_numbers = #tpu.dot_dimension_numbers<[1], [0], [0], [1], [0, 0, 1, 1], [], []>} : vector<8x8xbf16>, vector<8x16xbf16>, vector<8x16xf32> -> vector<8x16xf32>
    %c8_45 = arith.constant 8 : index
    %c16_46 = arith.constant 16 : index
    %147 = vector.load %arg14[%c8_45, %c16_46] : memref<16x32xf32, #tpu.memory_space<vmem>>, vector<8x16xf32>
    tpu.vector_store %arg14[%c8_45, %c16_46], %146 {strides = array<i32>} : memref<16x32xf32, #tpu.memory_space<vmem>>, vector<8x16xf32>,
    %c0_47 = arith.constant 0 : index
    %c0_48 = arith.constant 0 : index
    %148 = vector.load %arg14[%c0_47, %c0_48] : memref<16x32xf32, #tpu.memory_space<vmem>>, vector<16x32xf32>
    %149 = arith.truncf %148 : vector<16x32xf32> to vector<16x32xbf16>
    %c0_49 = arith.constant 0 : index
    %c0_50 = arith.constant 0 : index
    %c0_51 = arith.constant 0 : index
    %150 = vector.load %arg6[%c0_49, %c0_50, %c0_51] : memref<2x32x32xbf16, #tpu.memory_space<vmem>>, vector<1x32x32xbf16>
    %151 = vector.shape_cast %150 : vector<1x32x32xbf16> to vector<32x32xbf16>
    %cst_52 = arith.constant dense<0.000000e+00> : vector<16x32xf32>
    %152 = tpu.matmul %149, %151, %cst_52 {dimension_numbers = #tpu.dot_dimension_numbers<[1], [0], [0], [1], [0, 0, 1, 1], [], []>} : vector<16x32xbf16>, vector<32x32xbf16>, vector<16x32xf32> -> vector<16x32xf32>
    %153 = vector.broadcast %52 : vector<1x32xf32> to vector<16x32xf32>
    %154 = arith.addf %152, %153 : vector<16x32xf32>
    %155 = arith.addf %40, %154 : vector<16x32xf32>
    %cst_53 = arith.constant dense<0.000000e+00> : vector<16xf32>
    %156 = vector.multi_reduction <add>, %155, %cst_53 [1] : vector<16x32xf32> to vector<16xf32>
    %157 = vector.shape_cast %156 : vector<16xf32> to vector<16x1xf32>
    %cst_54 = arith.constant 3.200000e+01 : f32
    %158 = vector.broadcast %cst_54 : f32 to vector<16x1xf32>
    %159 = arith.divf %157, %158 : vector<16x1xf32>
    %160 = vector.broadcast %159 : vector<16x1xf32> to vector<16x32xf32>
    %161 = arith.subf %155, %160 : vector<16x32xf32>
    %162 = arith.mulf %161, %161 : vector<16x32xf32>
    %cst_55 = arith.constant dense<0.000000e+00> : vector<16xf32>
    %163 = vector.multi_reduction <add>, %162, %cst_55 [1] : vector<16x32xf32> to vector<16xf32>
    %164 = vector.shape_cast %163 : vector<16xf32> to vector<16x1xf32>
    %cst_56 = arith.constant 3.200000e+01 : f32
    %165 = vector.broadcast %cst_56 : f32 to vector<16x1xf32>
    %166 = arith.divf %164, %165 : vector<16x1xf32>
    %167 = vector.broadcast %159 : vector<16x1xf32> to vector<16x32xf32>
    %168 = arith.subf %155, %167 : vector<16x32xf32>
    %cst_57 = arith.constant 9.99999996E-13 : f32
    %169 = vector.broadcast %cst_57 : f32 to vector<16x1xf32>
    %170 = arith.addf %166, %169 : vector<16x1xf32>
    %171 = math.rsqrt %170 : vector<16x1xf32>
    %172 = vector.broadcast %171 : vector<16x1xf32> to vector<16x32xf32>
    %173 = arith.mulf %168, %172 : vector<16x32xf32>
    %174 = vector.broadcast %48 : vector<1x32xf32> to vector<16x32xf32>
    %175 = arith.mulf %173, %174 : vector<16x32xf32>
    %176 = vector.broadcast %49 : vector<1x32xf32> to vector<16x32xf32>
    %177 = arith.addf %175, %176 : vector<16x32xf32>
    %178 = arith.truncf %177 : vector<16x32xf32> to vector<16x32xbf16>
    %c0_58 = arith.constant 0 : index
    %c0_59 = arith.constant 0 : index
    %c0_60 = arith.constant 0 : index
    %179 = vector.load %arg7[%c0_58, %c0_59, %c0_60] : memref<2x32x64xbf16, #tpu.memory_space<vmem>>, vector<1x32x64xbf16>
    %180 = vector.shape_cast %179 : vector<1x32x64xbf16> to vector<32x64xbf16>
    %cst_61 = arith.constant dense<0.000000e+00> : vector<16x64xf32>
    %181 = tpu.matmul %178, %180, %cst_61 {dimension_numbers = #tpu.dot_dimension_numbers<[1], [0], [0], [1], [0, 0, 1, 1], [], []>} : vector<16x32xbf16>, vector<32x64xbf16>, vector<16x64xf32> -> vector<16x64xf32>
    %c0_62 = arith.constant 0 : index
    %c0_63 = arith.constant 0 : index
    %c0_64 = arith.constant 0 : index
    %182 = vector.load %arg8[%c0_62, %c0_63, %c0_64] : memref<2x1x64xf32, #tpu.memory_space<vmem>>, vector<1x1x64xf32>
    %183 = vector.shape_cast %182 : vector<1x1x64xf32> to vector<1x64xf32>
    %184 = vector.broadcast %183 : vector<1x64xf32> to vector<16x64xf32>
    %185 = arith.addf %181, %184 : vector<16x64xf32>
    %186 = arith.mulf %185, %185 : vector<16x64xf32>
    %187 = arith.mulf %185, %186 : vector<16x64xf32>
    %cst_65 = arith.constant 4.471500e-02 : f32
    %188 = vector.broadcast %cst_65 : f32 to vector<16x64xf32>
    %189 = arith.mulf %188, %187 : vector<16x64xf32>
    %190 = arith.addf %185, %189 : vector<16x64xf32>
    %cst_66 = arith.constant 0.797884583 : f32
    %191 = vector.broadcast %cst_66 : f32 to vector<16x64xf32>
    %192 = arith.mulf %191, %190 : vector<16x64xf32>
    %193 = math.tanh %192 : vector<16x64xf32>
    %cst_67 = arith.constant 1.000000e+00 : f32
    %194 = vector.broadcast %cst_67 : f32 to vector<16x64xf32>
    %195 = arith.addf %194, %193 : vector<16x64xf32>
    %cst_68 = arith.constant 5.000000e-01 : f32
    %196 = vector.broadcast %cst_68 : f32 to vector<16x64xf32>
    %197 = arith.mulf %196, %195 : vector<16x64xf32>
    %198 = arith.mulf %185, %197 : vector<16x64xf32>
    %199 = arith.truncf %198 : vector<16x64xf32> to vector<16x64xbf16>
    %c0_69 = arith.constant 0 : index
    %c0_70 = arith.constant 0 : index
    %c0_71 = arith.constant 0 : index
    %200 = vector.load %arg9[%c0_69, %c0_70, %c0_71] : memref<2x64x32xbf16, #tpu.memory_space<vmem>>, vector<1x64x32xbf16>
    %201 = vector.shape_cast %200 : vector<1x64x32xbf16> to vector<64x32xbf16>
    %cst_72 = arith.constant dense<0.000000e+00> : vector<16x32xf32>
    %202 = tpu.matmul %199, %201, %cst_72 {dimension_numbers = #tpu.dot_dimension_numbers<[1], [0], [0], [1], [0, 0, 1, 1], [], []>} : vector<16x64xbf16>, vector<64x32xbf16>, vector<16x32xf32> -> vector<16x32xf32>
    %203 = vector.broadcast %53 : vector<1x32xf32> to vector<16x32xf32>
    %204 = arith.addf %202, %203 : vector<16x32xf32>
    %205 = arith.addf %177, %204 : vector<16x32xf32>
    %cst_73 = arith.constant dense<0.000000e+00> : vector<16xf32>
    %206 = vector.multi_reduction <add>, %205, %cst_73 [1] : vector<16x32xf32> to vector<16xf32>
    %207 = vector.shape_cast %206 : vector<16xf32> to vector<16x1xf32>
    %cst_74 = arith.constant 3.200000e+01 : f32
    %208 = vector.broadcast %cst_74 : f32 to vector<16x1xf32>
    %209 = arith.divf %207, %208 : vector<16x1xf32>
    %210 = vector.broadcast %209 : vector<16x1xf32> to vector<16x32xf32>
    %211 = arith.subf %205, %210 : vector<16x32xf32>
    %212 = arith.mulf %211, %211 : vector<16x32xf32>
    %cst_75 = arith.constant dense<0.000000e+00> : vector<16xf32>
    %213 = vector.multi_reduction <add>, %212, %cst_75 [1] : vector<16x32xf32> to vector<16xf32>
    %214 = vector.shape_cast %213 : vector<16xf32> to vector<16x1xf32>
    %cst_76 = arith.constant 3.200000e+01 : f32
    %215 = vector.broadcast %cst_76 : f32 to vector<16x1xf32>
    %216 = arith.divf %214, %215 : vector<16x1xf32>
    %217 = vector.broadcast %209 : vector<16x1xf32> to vector<16x32xf32>
    %218 = arith.subf %205, %217 : vector<16x32xf32>
    %cst_77 = arith.constant 9.99999996E-13 : f32
    %219 = vector.broadcast %cst_77 : f32 to vector<16x1xf32>
    %220 = arith.addf %216, %219 : vector<16x1xf32>
    %221 = math.rsqrt %220 : vector<16x1xf32>
    %222 = vector.broadcast %221 : vector<16x1xf32> to vector<16x32xf32>
    %223 = arith.mulf %218, %222 : vector<16x32xf32>
    %224 = vector.broadcast %50 : vector<1x32xf32> to vector<16x32xf32>
    %225 = arith.mulf %223, %224 : vector<16x32xf32>
    %226 = vector.broadcast %51 : vector<1x32xf32> to vector<16x32xf32>
    %227 = arith.addf %225, %226 : vector<16x32xf32>
    %c1_78 = arith.constant 1 : index
    %c0_79 = arith.constant 0 : index
    %c0_80 = arith.constant 0 : index
    %228 = vector.load %arg10[%c1_78, %c0_79, %c0_80] : memref<2x6x32xf32, #tpu.memory_space<vmem>>, vector<1x6x32xf32>
    %229 = vector.shape_cast %228 : vector<1x6x32xf32> to vector<6x32xf32>
    %230 = vector.extract_strided_slice %229 {offsets = [0, 0], sizes = [1, 32], strides = [1, 1]} : vector<6x32xf32> to vector<1x32xf32>
    %231 = vector.extract_strided_slice %229 {offsets = [1, 0], sizes = [1, 32], strides = [1, 1]} : vector<6x32xf32> to vector<1x32xf32>
    %232 = vector.extract_strided_slice %229 {offsets = [2, 0], sizes = [1, 32], strides = [1, 1]} : vector<6x32xf32> to vector<1x32xf32>
    %233 = vector.extract_strided_slice %229 {offsets = [3, 0], sizes = [1, 32], strides = [1, 1]} : vector<6x32xf32> to vector<1x32xf32>
    %234 = vector.extract_strided_slice %229 {offsets = [4, 0], sizes = [1, 32], strides = [1, 1]} : vector<6x32xf32> to vector<1x32xf32>
    %235 = vector.extract_strided_slice %229 {offsets = [5, 0], sizes = [1, 32], strides = [1, 1]} : vector<6x32xf32> to vector<1x32xf32>
    %236 = arith.truncf %227 : vector<16x32xf32> to vector<16x32xbf16>
    %c1_81 = arith.constant 1 : index
    %c0_82 = arith.constant 0 : index
    %c0_83 = arith.constant 0 : index
    %237 = vector.load %arg4[%c1_81, %c0_82, %c0_83] : memref<2x32x96xbf16, #tpu.memory_space<vmem>>, vector<1x32x96xbf16>
    %238 = vector.shape_cast %237 : vector<1x32x96xbf16> to vector<32x96xbf16>
    %cst_84 = arith.constant dense<0.000000e+00> : vector<16x96xf32>
    %239 = tpu.matmul %236, %238, %cst_84 {dimension_numbers = #tpu.dot_dimension_numbers<[1], [0], [0], [1], [0, 0, 1, 1], [], []>} : vector<16x32xbf16>, vector<32x96xbf16>, vector<16x96xf32> -> vector<16x96xf32>
    %c1_85 = arith.constant 1 : index
    %c0_86 = arith.constant 0 : index
    %c0_87 = arith.constant 0 : index
    %240 = vector.load %arg5[%c1_85, %c0_86, %c0_87] : memref<2x1x96xf32, #tpu.memory_space<vmem>>, vector<1x1x96xf32>
    %241 = vector.shape_cast %240 : vector<1x1x96xf32> to vector<1x96xf32>
    %242 = vector.broadcast %241 : vector<1x96xf32> to vector<16x96xf32>
    %243 = arith.addf %239, %242 : vector<16x96xf32>
    %244 = vector.extract_strided_slice %45 {offsets = [0, 0], sizes = [1, 8], strides = [1, 1]} : vector<2x8xf32> to vector<1x8xf32>
    %245 = vector.extract_strided_slice %243 {offsets = [0, 0], sizes = [8, 16], strides = [1, 1]} : vector<16x96xf32> to vector<8x16xf32>
    %246 = arith.truncf %245 : vector<8x16xf32> to vector<8x16xbf16>
    %247 = vector.extract_strided_slice %243 {offsets = [0, 32], sizes = [8, 16], strides = [1, 1]} : vector<16x96xf32> to vector<8x16xf32>
    %248 = arith.truncf %247 : vector<8x16xf32> to vector<8x16xbf16>
    %249 = vector.extract_strided_slice %243 {offsets = [0, 64], sizes = [8, 16], strides = [1, 1]} : vector<16x96xf32> to vector<8x16xf32>
    %250 = arith.truncf %249 : vector<8x16xf32> to vector<8x16xbf16>
    %cst_88 = arith.constant dense<0.000000e+00> : vector<8x8xf32>
    %251 = tpu.matmul %246, %248, %cst_88 {dimension_numbers = #tpu.dot_dimension_numbers<[1], [1], [0], [0], [0, 0, 1, 0], [], []>} : vector<8x16xbf16>, vector<8x16xbf16>, vector<8x8xf32> -> vector<8x8xf32>
    %252 = vector.broadcast %244 : vector<1x8xf32> to vector<8x8xf32>
    %253 = arith.addf %251, %252 : vector<8x8xf32>
    %cst_89 = arith.constant dense<0xFF800000> : vector<8xf32>
    %254 = vector.multi_reduction <maximumf>, %253, %cst_89 [1] : vector<8x8xf32> to vector<8xf32>
    %255 = vector.shape_cast %254 : vector<8xf32> to vector<8x1xf32>
    %256 = vector.broadcast %255 : vector<8x1xf32> to vector<8x8xf32>
    %257 = arith.subf %253, %256 : vector<8x8xf32>
    %258 = math.exp %257 : vector<8x8xf32>
    %cst_90 = arith.constant dense<0.000000e+00> : vector<8xf32>
    %259 = vector.multi_reduction <add>, %258, %cst_90 [1] : vector<8x8xf32> to vector<8xf32>
    %260 = vector.shape_cast %259 : vector<8xf32> to vector<8x1xf32>
    %261 = vector.broadcast %260 : vector<8x1xf32> to vector<8x8xf32>
    %262 = arith.divf %258, %261 : vector<8x8xf32>
    %263 = arith.truncf %262 : vector<8x8xf32> to vector<8x8xbf16>
    %cst_91 = arith.constant dense<0.000000e+00> : vector<8x16xf32>
    %264 = tpu.matmul %263, %250, %cst_91 {dimension_numbers = #tpu.dot_dimension_numbers<[1], [0], [0], [1], [0, 0, 1, 1], [], []>} : vector<8x8xbf16>, vector<8x16xbf16>, vector<8x16xf32> -> vector<8x16xf32>
    %c0_92 = arith.constant 0 : index
    %c0_93 = arith.constant 0 : index
    %265 = vector.load %arg14[%c0_92, %c0_93] : memref<16x32xf32, #tpu.memory_space<vmem>>, vector<8x16xf32>
    tpu.vector_store %arg14[%c0_92, %c0_93], %264 {strides = array<i32>} : memref<16x32xf32, #tpu.memory_space<vmem>>, vector<8x16xf32>,
    %266 = vector.extract_strided_slice %243 {offsets = [0, 16], sizes = [8, 16], strides = [1, 1]} : vector<16x96xf32> to vector<8x16xf32>
    %267 = arith.truncf %266 : vector<8x16xf32> to vector<8x16xbf16>
    %268 = vector.extract_strided_slice %243 {offsets = [0, 48], sizes = [8, 16], strides = [1, 1]} : vector<16x96xf32> to vector<8x16xf32>
    %269 = arith.truncf %268 : vector<8x16xf32> to vector<8x16xbf16>
    %270 = vector.extract_strided_slice %243 {offsets = [0, 80], sizes = [8, 16], strides = [1, 1]} : vector<16x96xf32> to vector<8x16xf32>
    %271 = arith.truncf %270 : vector<8x16xf32> to vector<8x16xbf16>
    %cst_94 = arith.constant dense<0.000000e+00> : vector<8x8xf32>
    %272 = tpu.matmul %267, %269, %cst_94 {dimension_numbers = #tpu.dot_dimension_numbers<[1], [1], [0], [0], [0, 0, 1, 0], [], []>} : vector<8x16xbf16>, vector<8x16xbf16>, vector<8x8xf32> -> vector<8x8xf32>
    %273 = vector.broadcast %244 : vector<1x8xf32> to vector<8x8xf32>
    %274 = arith.addf %272, %273 : vector<8x8xf32>
    %cst_95 = arith.constant dense<0xFF800000> : vector<8xf32>
    %275 = vector.multi_reduction <maximumf>, %274, %cst_95 [1] : vector<8x8xf32> to vector<8xf32>
    %276 = vector.shape_cast %275 : vector<8xf32> to vector<8x1xf32>
    %277 = vector.broadcast %276 : vector<8x1xf32> to vector<8x8xf32>
    %278 = arith.subf %274, %277 : vector<8x8xf32>
    %279 = math.exp %278 : vector<8x8xf32>
    %cst_96 = arith.constant dense<0.000000e+00> : vector<8xf32>
    %280 = vector.multi_reduction <add>, %279, %cst_96 [1] : vector<8x8xf32> to vector<8xf32>
    %281 = vector.shape_cast %280 : vector<8xf32> to vector<8x1xf32>
    %282 = vector.broadcast %281 : vector<8x1xf32> to vector<8x8xf32>
    %283 = arith.divf %279, %282 : vector<8x8xf32>
    %284 = arith.truncf %283 : vector<8x8xf32> to vector<8x8xbf16>
    %cst_97 = arith.constant dense<0.000000e+00> : vector<8x16xf32>
    %285 = tpu.matmul %284, %271, %cst_97 {dimension_numbers = #tpu.dot_dimension_numbers<[1], [0], [0], [1], [0, 0, 1, 1], [], []>} : vector<8x8xbf16>, vector<8x16xbf16>, vector<8x16xf32> -> vector<8x16xf32>
    %c0_98 = arith.constant 0 : index
    %c16_99 = arith.constant 16 : index
    %286 = vector.load %arg14[%c0_98, %c16_99] : memref<16x32xf32, #tpu.memory_space<vmem>>, vector<8x16xf32>
    tpu.vector_store %arg14[%c0_98, %c16_99], %285 {strides = array<i32>} : memref<16x32xf32, #tpu.memory_space<vmem>>, vector<8x16xf32>,
    %287 = vector.extract_strided_slice %45 {offsets = [1, 0], sizes = [1, 8], strides = [1, 1]} : vector<2x8xf32> to vector<1x8xf32>
    %288 = vector.extract_strided_slice %243 {offsets = [8, 0], sizes = [8, 16], strides = [1, 1]} : vector<16x96xf32> to vector<8x16xf32>
    %289 = arith.truncf %288 : vector<8x16xf32> to vector<8x16xbf16>
    %290 = vector.extract_strided_slice %243 {offsets = [8, 32], sizes = [8, 16], strides = [1, 1]} : vector<16x96xf32> to vector<8x16xf32>
    %291 = arith.truncf %290 : vector<8x16xf32> to vector<8x16xbf16>
    %292 = vector.extract_strided_slice %243 {offsets = [8, 64], sizes = [8, 16], strides = [1, 1]} : vector<16x96xf32> to vector<8x16xf32>
    %293 = arith.truncf %292 : vector<8x16xf32> to vector<8x16xbf16>
    %cst_100 = arith.constant dense<0.000000e+00> : vector<8x8xf32>
    %294 = tpu.matmul %289, %291, %cst_100 {dimension_numbers = #tpu.dot_dimension_numbers<[1], [1], [0], [0], [0, 0, 1, 0], [], []>} : vector<8x16xbf16>, vector<8x16xbf16>, vector<8x8xf32> -> vector<8x8xf32>
    %295 = vector.broadcast %287 : vector<1x8xf32> to vector<8x8xf32>
    %296 = arith.addf %294, %295 : vector<8x8xf32>
    %cst_101 = arith.constant dense<0xFF800000> : vector<8xf32>
    %297 = vector.multi_reduction <maximumf>, %296, %cst_101 [1] : vector<8x8xf32> to vector<8xf32>
    %298 = vector.shape_cast %297 : vector<8xf32> to vector<8x1xf32>
    %299 = vector.broadcast %298 : vector<8x1xf32> to vector<8x8xf32>
    %300 = arith.subf %296, %299 : vector<8x8xf32>
    %301 = math.exp %300 : vector<8x8xf32>
    %cst_102 = arith.constant dense<0.000000e+00> : vector<8xf32>
    %302 = vector.multi_reduction <add>, %301, %cst_102 [1] : vector<8x8xf32> to vector<8xf32>
    %303 = vector.shape_cast %302 : vector<8xf32> to vector<8x1xf32>
    %304 = vector.broadcast %303 : vector<8x1xf32> to vector<8x8xf32>
    %305 = arith.divf %301, %304 : vector<8x8xf32>
    %306 = arith.truncf %305 : vector<8x8xf32> to vector<8x8xbf16>
    %cst_103 = arith.constant dense<0.000000e+00> : vector<8x16xf32>
    %307 = tpu.matmul %306, %293, %cst_103 {dimension_numbers = #tpu.dot_dimension_numbers<[1], [0], [0], [1], [0, 0, 1, 1], [], []>} : vector<8x8xbf16>, vector<8x16xbf16>, vector<8x16xf32> -> vector<8x16xf32>
    %c8_104 = arith.constant 8 : index
    %c0_105 = arith.constant 0 : index
    %308 = vector.load %arg14[%c8_104, %c0_105] : memref<16x32xf32, #tpu.memory_space<vmem>>, vector<8x16xf32>
    tpu.vector_store %arg14[%c8_104, %c0_105], %307 {strides = array<i32>} : memref<16x32xf32, #tpu.memory_space<vmem>>, vector<8x16xf32>,
    %309 = vector.extract_strided_slice %243 {offsets = [8, 16], sizes = [8, 16], strides = [1, 1]} : vector<16x96xf32> to vector<8x16xf32>
    %310 = arith.truncf %309 : vector<8x16xf32> to vector<8x16xbf16>
    %311 = vector.extract_strided_slice %243 {offsets = [8, 48], sizes = [8, 16], strides = [1, 1]} : vector<16x96xf32> to vector<8x16xf32>
    %312 = arith.truncf %311 : vector<8x16xf32> to vector<8x16xbf16>
    %313 = vector.extract_strided_slice %243 {offsets = [8, 80], sizes = [8, 16], strides = [1, 1]} : vector<16x96xf32> to vector<8x16xf32>
    %314 = arith.truncf %313 : vector<8x16xf32> to vector<8x16xbf16>
    %cst_106 = arith.constant dense<0.000000e+00> : vector<8x8xf32>
    %315 = tpu.matmul %310, %312, %cst_106 {dimension_numbers = #tpu.dot_dimension_numbers<[1], [1], [0], [0], [0, 0, 1, 0], [], []>} : vector<8x16xbf16>, vector<8x16xbf16>, vector<8x8xf32> -> vector<8x8xf32>
    %316 = vector.broadcast %287 : vector<1x8xf32> to vector<8x8xf32>
    %317 = arith.addf %315, %316 : vector<8x8xf32>
    %cst_107 = arith.constant dense<0xFF800000> : vector<8xf32>
    %318 = vector.multi_reduction <maximumf>, %317, %cst_107 [1] : vector<8x8xf32> to vector<8xf32>
    %319 = vector.shape_cast %318 : vector<8xf32> to vector<8x1xf32>
    %320 = vector.broadcast %319 : vector<8x1xf32> to vector<8x8xf32>
    %321 = arith.subf %317, %320 : vector<8x8xf32>
    %322 = math.exp %321 : vector<8x8xf32>
    %cst_108 = arith.constant dense<0.000000e+00> : vector<8xf32>
    %323 = vector.multi_reduction <add>, %322, %cst_108 [1] : vector<8x8xf32> to vector<8xf32>
    %324 = vector.shape_cast %323 : vector<8xf32> to vector<8x1xf32>
    %325 = vector.broadcast %324 : vector<8x1xf32> to vector<8x8xf32>
    %326 = arith.divf %322, %325 : vector<8x8xf32>
    %327 = arith.truncf %326 : vector<8x8xf32> to vector<8x8xbf16>
    %cst_109 = arith.constant dense<0.000000e+00> : vector<8x16xf32>
    %328 = tpu.matmul %327, %314, %cst_109 {dimension_numbers = #tpu.dot_dimension_numbers<[1], [0], [0], [1], [0, 0, 1, 1], [], []>} : vector<8x8xbf16>, vector<8x16xbf16>, vector<8x16xf32> -> vector<8x16xf32>
    %c8_110 = arith.constant 8 : index
    %c16_111 = arith.constant 16 : index
    %329 = vector.load %arg14[%c8_110, %c16_111] : memref<16x32xf32, #tpu.memory_space<vmem>>, vector<8x16xf32>
    tpu.vector_store %arg14[%c8_110, %c16_111], %328 {strides = array<i32>} : memref<16x32xf32, #tpu.memory_space<vmem>>, vector<8x16xf32>,
    %c0_112 = arith.constant 0 : index
    %c0_113 = arith.constant 0 : index
    %330 = vector.load %arg14[%c0_112, %c0_113] : memref<16x32xf32, #tpu.memory_space<vmem>>, vector<16x32xf32>
    %331 = arith.truncf %330 : vector<16x32xf32> to vector<16x32xbf16>
    %c1_114 = arith.constant 1 : index
    %c0_115 = arith.constant 0 : index
    %c0_116 = arith.constant 0 : index
    %332 = vector.load %arg6[%c1_114, %c0_115, %c0_116] : memref<2x32x32xbf16, #tpu.memory_space<vmem>>, vector<1x32x32xbf16>
    %333 = vector.shape_cast %332 : vector<1x32x32xbf16> to vector<32x32xbf16>
    %cst_117 = arith.constant dense<0.000000e+00> : vector<16x32xf32>
    %334 = tpu.matmul %331, %333, %cst_117 {dimension_numbers = #tpu.dot_dimension_numbers<[1], [0], [0], [1], [0, 0, 1, 1], [], []>} : vector<16x32xbf16>, vector<32x32xbf16>, vector<16x32xf32> -> vector<16x32xf32>
    %335 = vector.broadcast %234 : vector<1x32xf32> to vector<16x32xf32>
    %336 = arith.addf %334, %335 : vector<16x32xf32>
    %337 = arith.addf %227, %336 : vector<16x32xf32>
    %cst_118 = arith.constant dense<0.000000e+00> : vector<16xf32>
    %338 = vector.multi_reduction <add>, %337, %cst_118 [1] : vector<16x32xf32> to vector<16xf32>
    %339 = vector.shape_cast %338 : vector<16xf32> to vector<16x1xf32>
    %cst_119 = arith.constant 3.200000e+01 : f32
    %340 = vector.broadcast %cst_119 : f32 to vector<16x1xf32>
    %341 = arith.divf %339, %340 : vector<16x1xf32>
    %342 = vector.broadcast %341 : vector<16x1xf32> to vector<16x32xf32>
    %343 = arith.subf %337, %342 : vector<16x32xf32>
    %344 = arith.mulf %343, %343 : vector<16x32xf32>
    %cst_120 = arith.constant dense<0.000000e+00> : vector<16xf32>
    %345 = vector.multi_reduction <add>, %344, %cst_120 [1] : vector<16x32xf32> to vector<16xf32>
    %346 = vector.shape_cast %345 : vector<16xf32> to vector<16x1xf32>
    %cst_121 = arith.constant 3.200000e+01 : f32
    %347 = vector.broadcast %cst_121 : f32 to vector<16x1xf32>
    %348 = arith.divf %346, %347 : vector<16x1xf32>
    %349 = vector.broadcast %341 : vector<16x1xf32> to vector<16x32xf32>
    %350 = arith.subf %337, %349 : vector<16x32xf32>
    %cst_122 = arith.constant 9.99999996E-13 : f32
    %351 = vector.broadcast %cst_122 : f32 to vector<16x1xf32>
    %352 = arith.addf %348, %351 : vector<16x1xf32>
    %353 = math.rsqrt %352 : vector<16x1xf32>
    %354 = vector.broadcast %353 : vector<16x1xf32> to vector<16x32xf32>
    %355 = arith.mulf %350, %354 : vector<16x32xf32>
    %356 = vector.broadcast %230 : vector<1x32xf32> to vector<16x32xf32>
    %357 = arith.mulf %355, %356 : vector<16x32xf32>
    %358 = vector.broadcast %231 : vector<1x32xf32> to vector<16x32xf32>
    %359 = arith.addf %357, %358 : vector<16x32xf32>
    %360 = arith.truncf %359 : vector<16x32xf32> to vector<16x32xbf16>
    %c1_123 = arith.constant 1 : index
    %c0_124 = arith.constant 0 : index
    %c0_125 = arith.constant 0 : index
    %361 = vector.load %arg7[%c1_123, %c0_124, %c0_125] : memref<2x32x64xbf16, #tpu.memory_space<vmem>>, vector<1x32x64xbf16>
    %362 = vector.shape_cast %361 : vector<1x32x64xbf16> to vector<32x64xbf16>
    %cst_126 = arith.constant dense<0.000000e+00> : vector<16x64xf32>
    %363 = tpu.matmul %360, %362, %cst_126 {dimension_numbers = #tpu.dot_dimension_numbers<[1], [0], [0], [1], [0, 0, 1, 1], [], []>} : vector<16x32xbf16>, vector<32x64xbf16>, vector<16x64xf32> -> vector<16x64xf32>
    %c1_127 = arith.constant 1 : index
    %c0_128 = arith.constant 0 : index
    %c0_129 = arith.constant 0 : index
    %364 = vector.load %arg8[%c1_127, %c0_128, %c0_129] : memref<2x1x64xf32, #tpu.memory_space<vmem>>, vector<1x1x64xf32>
    %365 = vector.shape_cast %364 : vector<1x1x64xf32> to vector<1x64xf32>
    %366 = vector.broadcast %365 : vector<1x64xf32> to vector<16x64xf32>
    %367 = arith.addf %363, %366 : vector<16x64xf32>
    %368 = arith.mulf %367, %367 : vector<16x64xf32>
    %369 = arith.mulf %367, %368 : vector<16x64xf32>
    %cst_130 = arith.constant 4.471500e-02 : f32
    %370 = vector.broadcast %cst_130 : f32 to vector<16x64xf32>
    %371 = arith.mulf %370, %369 : vector<16x64xf32>
    %372 = arith.addf %367, %371 : vector<16x64xf32>
    %cst_131 = arith.constant 0.797884583 : f32
    %373 = vector.broadcast %cst_131 : f32 to vector<16x64xf32>
    %374 = arith.mulf %373, %372 : vector<16x64xf32>
    %375 = math.tanh %374 : vector<16x64xf32>
    %cst_132 = arith.constant 1.000000e+00 : f32
    %376 = vector.broadcast %cst_132 : f32 to vector<16x64xf32>
    %377 = arith.addf %376, %375 : vector<16x64xf32>
    %cst_133 = arith.constant 5.000000e-01 : f32
    %378 = vector.broadcast %cst_133 : f32 to vector<16x64xf32>
    %379 = arith.mulf %378, %377 : vector<16x64xf32>
    %380 = arith.mulf %367, %379 : vector<16x64xf32>
    %381 = arith.truncf %380 : vector<16x64xf32> to vector<16x64xbf16>
    %c1_134 = arith.constant 1 : index
    %c0_135 = arith.constant 0 : index
    %c0_136 = arith.constant 0 : index
    %382 = vector.load %arg9[%c1_134, %c0_135, %c0_136] : memref<2x64x32xbf16, #tpu.memory_space<vmem>>, vector<1x64x32xbf16>
    %383 = vector.shape_cast %382 : vector<1x64x32xbf16> to vector<64x32xbf16>
    %cst_137 = arith.constant dense<0.000000e+00> : vector<16x32xf32>
    %384 = tpu.matmul %381, %383, %cst_137 {dimension_numbers = #tpu.dot_dimension_numbers<[1], [0], [0], [1], [0, 0, 1, 1], [], []>} : vector<16x64xbf16>, vector<64x32xbf16>, vector<16x32xf32> -> vector<16x32xf32>
    %385 = vector.broadcast %235 : vector<1x32xf32> to vector<16x32xf32>
    %386 = arith.addf %384, %385 : vector<16x32xf32>
    %387 = arith.addf %359, %386 : vector<16x32xf32>
    %cst_138 = arith.constant dense<0.000000e+00> : vector<16xf32>
    %388 = vector.multi_reduction <add>, %387, %cst_138 [1] : vector<16x32xf32> to vector<16xf32>
    %389 = vector.shape_cast %388 : vector<16xf32> to vector<16x1xf32>
    %cst_139 = arith.constant 3.200000e+01 : f32
    %390 = vector.broadcast %cst_139 : f32 to vector<16x1xf32>
    %391 = arith.divf %389, %390 : vector<16x1xf32>
    %392 = vector.broadcast %391 : vector<16x1xf32> to vector<16x32xf32>
    %393 = arith.subf %387, %392 : vector<16x32xf32>
    %394 = arith.mulf %393, %393 : vector<16x32xf32>
    %cst_140 = arith.constant dense<0.000000e+00> : vector<16xf32>
    %395 = vector.multi_reduction <add>, %394, %cst_140 [1] : vector<16x32xf32> to vector<16xf32>
    %396 = vector.shape_cast %395 : vector<16xf32> to vector<16x1xf32>
    %cst_141 = arith.constant 3.200000e+01 : f32
    %397 = vector.broadcast %cst_141 : f32 to vector<16x1xf32>
    %398 = arith.divf %396, %397 : vector<16x1xf32>
    %399 = vector.broadcast %391 : vector<16x1xf32> to vector<16x32xf32>
    %400 = arith.subf %387, %399 : vector<16x32xf32>
    %cst_142 = arith.constant 9.99999996E-13 : f32
    %401 = vector.broadcast %cst_142 : f32 to vector<16x1xf32>
    %402 = arith.addf %398, %401 : vector<16x1xf32>
    %403 = math.rsqrt %402 : vector<16x1xf32>
    %404 = vector.broadcast %403 : vector<16x1xf32> to vector<16x32xf32>
    %405 = arith.mulf %400, %404 : vector<16x32xf32>
    %406 = vector.broadcast %232 : vector<1x32xf32> to vector<16x32xf32>
    %407 = arith.mulf %405, %406 : vector<16x32xf32>
    %408 = vector.broadcast %233 : vector<1x32xf32> to vector<16x32xf32>
    %409 = arith.addf %407, %408 : vector<16x32xf32>
    %c0_143 = arith.constant 0 : index
    %c0_144 = arith.constant 0 : index
    %410 = vector.load %arg11[%c0_143, %c0_144] : memref<1x32xf32, #tpu.memory_space<vmem>>, vector<1x32xf32>
    %411 = vector.extract_strided_slice %409 {offsets = [0, 0], sizes = [1, 32], strides = [1, 1]} : vector<16x32xf32> to vector<1x32xf32>
    %412 = arith.mulf %411, %410 : vector<1x32xf32>
    %cst_145 = arith.constant dense<0.000000e+00> : vector<1xf32>
    %413 = vector.multi_reduction <add>, %412, %cst_145 [1] : vector<1x32xf32> to vector<1xf32>
    %414 = vector.shape_cast %413 : vector<1xf32> to vector<1x1xf32>
    %415 = vector.extract_strided_slice %409 {offsets = [8, 0], sizes = [1, 32], strides = [1, 1]} : vector<16x32xf32> to vector<1x32xf32>
    %416 = arith.mulf %415, %410 : vector<1x32xf32>
    %cst_146 = arith.constant dense<0.000000e+00> : vector<1xf32>
    %417 = vector.multi_reduction <add>, %416, %cst_146 [1] : vector<1x32xf32> to vector<1xf32>
    %418 = vector.shape_cast %417 : vector<1xf32> to vector<1x1xf32>
    %419 = tpu.concatenate %414, %418 in 1 : vector<1x1xf32>, vector<1x1xf32> -> vector<1x2xf32>
    %c0_147 = arith.constant 0 : index
    %c0_148 = arith.constant 0 : index
    %420 = memref.load %arg12[%c0_147, %c0_148] : memref<1x1xf32, #tpu.memory_space<smem>>
    %421 = vector.broadcast %420 : f32 to vector<1x2xf32>
    %422 = arith.addf %419, %421 : vector<1x2xf32>
    %423 = math.tanh %422 : vector<1x2xf32>
    %c0_149 = arith.constant 0 : index
    %c0_150 = arith.constant 0 : index
    %424 = vector.load %arg13[%c0_149, %c0_150] : memref<1x2xf32, #tpu.memory_space<vmem>>, vector<1x2xf32>
    tpu.vector_store %arg13[%c0_149, %c0_150], %423 {strides = array<i32>} : memref<1x2xf32, #tpu.memory_space<vmem>>, vector<1x2xf32>,
    return
  }
}

</mosaic_0001>

<bundles_post_ra>
// kernel: plm_rerank_forward.1
= control target key start
LH: loop header
LB: loop body
LE: loop exit
PB: predicated region body
PF: predicated region fallthrough
CT: control target
= control target key end

     0   :  { %vm98_vm0 = vcmask 1043456   ;;  %v1652_v1 = vmov 2   ;;  %v1653_v2 = vmov 0   ;;  %v1654_v5 = vmov 1   ;;  %s2079_s0 = inlined_call_operand.vmem [shape: s32[16,3], index: 0, kind: input, shape index: {}]   ;;  %s2080_s1 = inlined_call_operand.vmem [shape: f32[2,8], index: 1, kind: input, shape index: {}]   ;;  %s2081_s2 = inlined_call_operand.vmem [shape: f32[60,32], index: 2, kind: input, shape index: {}]   ;;  %s2082_s3 = inlined_call_operand.vmem [shape: f32[2,32], index: 3, kind: input, shape index: {}]   ;;  %s2083_s4 = inlined_call_operand.vmem [shape: bf16[2,32,96], index: 4, kind: input, shape index: {}]   ;;  %s2084_s5 = inlined_call_operand.vmem [shape: f32[2,1,96], index: 5, kind: input, shape index: {}]   ;;  %s2085_s6 = inlined_call_operand.vmem [shape: bf16[2,32,32], index: 6, kind: input, shape index: {}]   ;;  %s2086_s7 = inlined_call_operand.vmem [shape: bf16[2,32,64], index: 7, kind: input, shape index: {}]   ;;  %s2087_s8 = inlined_call_operand.vmem [shape: f32[2,1,64], index: 8, kind: input, shape index: {}]   ;;  %s2088_s9 = inlined_call_operand.vmem [shape: bf16[2,64,32], index: 9, kind: input, shape index: {}]   ;;  %s2089_s10 = inlined_call_operand.vmem [shape: f32[2,6,32], index: 10, kind: input, shape index: {}]   ;;  %s2090_s11 = inlined_call_operand.vmem [shape: f32[1,32], index: 11, kind: input, shape index: {}]   ;;  %s2091_s12 = inlined_call_operand.<no memory space> [shape: f32[1,1], index: 12, kind: input, shape index: {}]   ;;  %s2092_s13 = inlined_call_operand.hbm [shape: f32[1,2], index: 13, kind: output, shape index: {}]  }
   0x1   :  { %v47_v0 = vld [vmem:[%s2079_s0] sm:$0xff]  ;;  %1551 = vset.pattern.permute.xlu1 %v1652_v1  ;;  %1549 = vset.pattern.permute.xlu0 %v1653_v2  ;;  %v90_v3 = vld [vmem:[%s2081_s2 + $0x38] sm:$0xf]  ;;  %v48_v4 = vld [vmem:[%s2079_s0 + $0x8] sm:$0xff] }
   0x2   :  { %70 = vperm.xlu1 %1551, %v47_v0   ;;  %52 = vperm.xlu0 %1549, %v47_v0  }
   0x3   :  { %1553 = vset.pattern.permute.xlu2 %v1654_v5  ;;  %1387 = vmatpush.msk.msra.mxu0 %vm98_vm0, %v90_v3 }
   0x4   :  { %19 = vsyncpa [#allocation5], 0  ;;  %63 = vperm.xlu2 %1553, %v48_v4   ;;  %v89_v6 = vld [vmem:[%s2081_s2 + $0x30] sm:$0xff]  ;;  %v88_v7 = vld [vmem:[%s2081_s2 + $0x28] sm:$0xff]  ;;  %v49_v15 = vlaneseq  ;;  %vm91_vm5 = vcmask 490496   ;;  %v1655_v21 = vmov 0.0  }
   0x5   :  { %111 = vmatpush.msra.mxu0 %v89_v6  ;;  %v87_v8 = vld [vmem:[%s2081_s2 + $0x20] sm:$0xff]  ;;  %v86_v9 = vld [vmem:[%s2081_s2 + $0x18] sm:$0xff]  ;;  %v85_v10 = vld [vmem:[%s2081_s2 + $0x10] sm:$0xff]  ;;  %vm127_vm12 = vcmask 261120   ;;  %v1656_v28 = vmov 32.0   ;;  %s1657_s18 = smov 96  }
   0x6   :  { %v84_v11 = vld [vmem:[%s2081_s2 + $0x8] sm:$0xff]  ;;  %v83_v12 = vld [vmem:[%s2081_s2] sm:$0xff]  ;;  %v50_v17 = vand.u32 127, %v49_v15  ;;  %1562 = vrcp.f32 %v1656_v28  ;;  %s1659_s19 = smov 80   ;;  %s1660_s22 = smov 64  }
   0x7   :  { %112 = vmatpush.msra.mxu0 %v88_v7  ;;  %v1518_v45 = vld [vmem:[%s2083_s4 + $0x8] sm:$0xff]  ;;  %v1517_v48 = vld [vmem:[%s2083_s4] sm:$0xff]  ;;  %s1662_s23 = smov 16   ;;  %s1376_s15 = sshll.u32 %s2092_s13, 4  ;;  %s1377_s15 = int_to_ptr.hbm [resolvable:$true] %s1376_s15 }
   0x8   :  { %219 = vmatpush.bf16.msra.mxu1 %v1518_v45  ;;  %v1557_v7 = vld [vmem:[%s2082_s3 + $0x1] ss:$0 sm:$0xff] }
   0x9   :  { %113 = vmatpush.msra.mxu0 %v87_v8 }
   0xa   :  { %1552 = vset.pattern.permute.xlu1 %v1653_v2  ;;  %1550 = vset.pattern.permute.xlu0 %v1654_v5  ;;  %v1556_v2 = vld [vmem:[%s2082_s3] ss:$0 sm:$0xff]  ;;  %s1658_s3 = smov 112  }
   0xb   :  { %55 = vperm.xlu1 %1552, %v48_v4   ;;  %60 = vperm.xlu0 %1550, %v47_v0  }
   0xc   :  { %1554 = vset.pattern.permute.xlu2 %v1652_v1  ;;  %114 = vmatpush.msra.mxu0 %v86_v9  ;;  %v1563_v29 = vpop.eup %1562 }
   0xd   :  { %73 = vperm.xlu2 %1554, %v48_v4   ;;  %v135_v30 = vmul.f32 32.0, %v1563_v29  ;;  %vm139_vm13 = vweird.f32 %v1563_v29  ;;  %220 = vmatpush.bf16.msra.mxu1 %v1517_v48 }
   0xe   :  { %115 = vmatpush.msra.mxu0 %v85_v10 }
   0xf   :  { %v136_v31 = vsub.f32 1.0, %v135_v30 }
  0x10   :  { %116 = vmatpush.msra.mxu0 %v84_v11 }
  0x11   :  { %v137_v32 = vmul.f32 %v1563_v29, %v136_v31 }
  0x12   :  { %117 = vmatpush.msra.mxu0 %v83_v12  ;;  %v1558_v12 = vld [vmem:[%s2084_s5] ss:$0 sm:$0xff] }
  0x13   :  { %1555 = vset.pattern.permute.xlu0 %v1652_v1  ;;  %v138_v33 = vadd.f32 %v1563_v29, %v137_v32 }
  0x15   :  { %v1767_v34 = vsel %vm139_vm13, %v1563_v29, %v138_v33 }
  0x5e   :  { %v64_v16 = vpop.permute.xlu2 %63 }
  0x5f   :  { %vm66_vm6 = vcmp.eq.s32.totalorder %v50_v17, %v64_v16 }
  0x67   :  { %v74_v20 = vpop.permute.xlu2 %73 }
  0x68   :  { %vm76_vm10 = vcmp.eq.s32.totalorder %v50_v17, %v74_v20 }
  0x74   :  { %v53_v13 = vpop.permute.xlu0 %52  ;;  %v71_v14 = vpop.permute.xlu1 %70 }
  0x75   :  { %vm57_vm2 = vcmp.eq.s32.totalorder %v50_v17, %v53_v13  ;;  %vm75_vm3 = vcmp.eq.s32.totalorder %v50_v17, %v71_v14 }
  0x7d   :  { %v61_v18 = vpop.permute.xlu0 %60  ;;  %v56_v19 = vpop.permute.xlu1 %55 }
  0x7e   :  { %vm65_vm1 = vcmp.eq.s32.totalorder %v50_v17, %v61_v18  ;;  %vm58_vm7 = vcmp.eq.s32.totalorder %v50_v17, %v56_v19 }
  0x7f   :  { %vm67_vm4 = vmor %vm57_vm2, %vm65_vm1 }
  0x80   :  { %vm77_vm8 = vmor %vm67_vm4, %vm75_vm3 }
  0x81   :  { %v1385_v22 = vsel %vm77_vm8, 1.0, %v1655_v21  ;;  %vm68_vm9 = vmor %vm58_vm7, %vm66_vm6  ;;  %vm252_vm6 = vcmask 64512  }
  0x82   :  { %1388 = vmatmul.msk.f32.vlgmr.msra.gmra.mxu0 %vm91_vm5, %v1385_v22  ;;  %vm78_vm11 = vmor %vm68_vm9, %vm76_vm10 }
  0x83   :  { %v1386_v23 = vsel %vm78_vm11, 1.0, %v1655_v21  ;;  %v185_v21 = vld [vmem:[%s2080_s1] sm:$0x3]  ;;  %s1661_s1 = smov 48  }
  0x84   :  { %v186_v22 = vsub.f32 1.0, %v185_v21 }
  0x8a   :  { %1389 = vmatmul.msk.f32.gmra.mxu0 %vm91_vm5, %v1386_v23  ;;  %vm232_vm5 = vcmask 130048   ;;  %v1813_v23 = vmul.f32 -1e+09, %v186_v22 }
  0xff   :  { %v119_v24 = vpop.f32.mrf.mxu0 }
 0x100   :  { %v128_v25 = vsel %vm127_vm12, %v119_v24, 0.0 }
 0x101   :  { %129 = vadd.xlane.f32.xlu1 %v128_v25 }
 0x107   :  { %v122_v26 = vpop.f32.mrf.mxu0 }
 0x108   :  { %v131_v27 = vsel %vm127_vm12, %v122_v26, 0.0 }
 0x109   :  { %132 = vadd.xlane.f32.xlu2 %v131_v27 }
 0x174   :  { %v130_v35 = vpop.xlane.xlu1 %129 }
 0x175   :  { %v141_v36 = vmul.f32 %v1767_v34, %v130_v35 }
 0x177   :  { %v143_v37 = vsub.f32 %v119_v24, %v141_v36  ;;  %v1816_v24 = vperm.slane %v1813_v23, 0 }
 0x179   :  { %v145_v38 = vmul.f32 %v143_v37, %v143_v37 }
 0x17b   :  { %v147_v39 = vsel %vm127_vm12, %v145_v38, 0.0 }
 0x17c   :  { %148 = vadd.xlane.f32.xlu0 %v147_v39  ;;  %v133_v40 = vpop.xlane.xlu2 %132 }
 0x17d   :  { %v142_v41 = vmul.f32 %v1767_v34, %v133_v40 }
 0x17f   :  { %v144_v42 = vsub.f32 %v122_v26, %v142_v41 }
 0x181   :  { %v146_v43 = vmul.f32 %v144_v42, %v144_v42 }
 0x183   :  { %v150_v44 = vsel %vm127_vm12, %v146_v43, 0.0 }
 0x184   :  { %151 = vadd.xlane.f32.xlu2 %v150_v44 }
 0x1ef   :  { %v149_v46 = vpop.xlane.xlu0 %148 }
 0x1f0   :  { %v153_v47 = vmul.f32 %v149_v46, %v1767_v34 }
 0x1f2   :  { %v155_v49 = vadd.f32 1e-12, %v153_v47 }
 0x1f4   :  { %1564 = vrsqrt.f32 %v155_v49  ;;  %vm163_vm15 = vweird.f32 %v155_v49 }
 0x1f7   :  { %v152_v50 = vpop.xlane.xlu2 %151 }
 0x1f8   :  { %v154_v51 = vmul.f32 %v152_v50, %v1767_v34 }
 0x1fa   :  { %v1565_v52 = vpop.eup %1564  ;;  %v156_v53 = vadd.f32 1e-12, %v154_v51 }
 0x1fb   :  { %v158_v54 = vmul.f32 %v1565_v52, %v155_v49  ;;  %vm164_vm14 = vweird.f32 %v1565_v52 }
 0x1fc   :  { %1566 = vrsqrt.f32 %v156_v53  ;;  %vm165_vm1 = vmor %vm163_vm15, %vm164_vm14  ;;  %vm173_vm3 = vweird.f32 %v156_v53 }
 0x1fd   :  { %v159_v55 = vmul.f32 %v1565_v52, %v158_v54 }
 0x1ff   :  { %v160_v56 = vmul.f32 0.5, %v159_v55 }
 0x201   :  { %v161_v57 = vsub.f32 1.5, %v160_v56 }
 0x202   :  { %v1567_v58 = vpop.eup %1566 }
 0x203   :  { %v162_v59 = vmul.f32 %v1565_v52, %v161_v57  ;;  %v168_v60 = vmul.f32 %v1567_v58, %v156_v53  ;;  %vm174_vm2 = vweird.f32 %v1567_v58 }
 0x204   :  { %vm175_vm4 = vmor %vm173_vm3, %vm174_vm2 }
 0x205   :  { %v169_v61 = vmul.f32 %v1567_v58, %v168_v60  ;;  %v166_v62 = vsel %vm165_vm1, %v1565_v52, %v162_v59 }
 0x206   :  { %v177_v1 = vmul.f32 %v166_v62, %v143_v37 }
 0x207   :  { %v170_v63 = vmul.f32 0.5, %v169_v61 }
 0x208   :  { %v180_v6 = vmul.f32 %v1556_v2, %v177_v1 }
 0x209   :  { %v171_v0 = vsub.f32 1.5, %v170_v63 }
 0x20a   :  { %v1787_v9 = vadd.f32 %v1557_v7, %v180_v6 }
 0x20b   :  { %v172_v3 = vmul.f32 %v1567_v58, %v171_v0  ;;  %v1841_v0 = vperm.slane %v1813_v23, 1 }
 0x20d   :  { %v176_v4 = vsel %vm175_vm4, %v1567_v58, %v172_v3 }
 0x20e   :  { %v178_v5 = vmul.f32 %v176_v4, %v144_v42 }
 0x210   :  { %v181_v8 = vmul.f32 %v1556_v2, %v178_v5 }
 0x212   :  { %v1789_v10 = vadd.f32 %v1557_v7, %v181_v8 }
 0x214   :  { %v189_v11 = vpack.c.bf16 %v1789_v10, %v1787_v9 }
 0x216   :  { %1398 = vmatmul.msk.bf16.vlgmr.msra.gmra.mxu1 %vm127_vm12, %v189_v11 }
 0x293   :  { %v222_v13 = vpop.f32.mrf.mxu1 }
 0x294   :  { %v223_v14 = vadd.f32 %v1558_v12, %v222_v13 }
 0x296   :  { %v1797_v15 = vpack.c.bf16 %v223_v14, %v223_v14 }
 0x298   :  { %230 = vrot.lane.b32.xlu1 %v1797_v15, %s1657_s18 }
 0x29b   :  { %v224_v16 = vpop.f32.mrf.mxu1 }
 0x29c   :  { %v225_v17 = vadd.f32 %v1558_v12, %v224_v16 }
 0x29e   :  { %v1803_v18 = vpack.c.bf16 %v225_v17, %v225_v17 }
 0x2a0   :  { %300 = vrot.lane.b32.xlu1 %v1797_v15, %s1658_s3 }
 0x2a8   :  { %448 = vrot.lane.b32.xlu1 %v1803_v18, %s1659_s19 }
 0x30a   :  { %v231_v19 = vpop.permute.xlu1 %230 }
 0x30b   :  { %v237_v20 = vsel %vm232_vm5, %v231_v19, 0 }
 0x30c   :  { %246 = vmatpush.bf16.xpose.msra.mxu2 %v237_v20 }
 0x312   :  { %v301_v42 = vpop.permute.xlu1 %300 }
 0x313   :  { %1399 = vmatmul.msk.bf16.vlgmr.msra.gmra.mxu2 %vm232_vm5, %v1797_v15 }
 0x31a   :  { %v449_v52 = vpop.permute.xlu1 %448 }
 0x31b   :  { %v454_v56 = vsel %vm232_vm5, %v449_v52, 0 }
 0x396   :  { %v248_v25 = vpop.f32.mrf.mxu2 }
 0x397   :  { %v249_v26 = vadd.f32 %v248_v25, %v1816_v24 }
 0x399   :  { %v253_v27 = vsel %vm252_vm6, %v249_v26, -inf }
 0x39a   :  { %254 = vmax.xlane.f32.xlu2 %v253_v27 }
 0x39e   :  { %v250_v28 = vpop.f32.mrf.mxu2 }
 0x3b2   :  { %278 = vrot.lane.b32.xlu2 %v1797_v15, %s1660_s22 }
 0x3ba   :  { %378 = vrot.lane.b32.xlu2 %v1803_v18, %s1657_s18 }
 0x40d   :  { %v255_v29 = vpop.xlane.xlu2 %254 }
 0x40e   :  { %v256_v30 = vsub.f32 %v249_v26, %v255_v29 }
 0x410   :  { %v257_v31 = vmul.f32 1.442695, %v256_v30 }
 0x412   :  { %1568 = vpow2.f32 %v257_v31 }
 0x415   :  { %v279_v32 = vpop.permute.xlu2 %278 }
 0x416   :  { %v284_v33 = vsel %vm98_vm0, %v279_v32, 0 }
 0x417   :  { %293 = vmatpush.bf16.msra.mxu3 %v284_v33 }
 0x418   :  { %v1569_v35 = vpop.eup %1568 }
 0x419   :  { %v259_v36 = vsel %vm252_vm6, %v1569_v35, 0.0 }
 0x41a   :  { %260 = vadd.xlane.f32.xlu0 %v259_v36 }
 0x41d   :  { %v379_v37 = vpop.permute.xlu2 %378 }
 0x41e   :  { %v384_v38 = vsel %vm232_vm5, %v379_v37, 0 }
 0x41f   :  { %393 = vmatpush.bf16.xpose.msrb.mxu2 %v384_v38 }
 0x426   :  { %1403 = vmatmul.msk.bf16.vlgmr.msrb.gmra.mxu2 %vm232_vm5, %v1803_v18 }
 0x42e   :  { %302 = vrot.lane.b32.xlu0 %v1797_v15, %s1659_s19 }
 0x436   :  { %446 = vrot.lane.b32.xlu0 %v1803_v18, %s1658_s3 }
 0x48d   :  { %v261_v39 = vpop.xlane.xlu0 %260 }
 0x48e   :  { %1570 = vrcp.f32 %v261_v39  ;;  %v273_v44 = vand.u32 2147483648, %v261_v39  ;;  %v271_v46 = vand.u32 2147483647, %v261_v39  ;;  %vm267_vm8 = vweird.f32 %v261_v39 }
 0x490   :  { %v274_v48 = vor.u32 1.1754944e-38, %v273_v44  ;;  %vm272_vm10 = vcmp.eq.f32.partialorder %v271_v46, 8.507059e+37 }
 0x494   :  { %v1571_v40 = vpop.eup %1570 }
 0x495   :  { %v263_v41 = vmul.f32 %v1571_v40, %v261_v39  ;;  %vm268_vm7 = vweird.f32 %v1571_v40 }
 0x496   :  { %vm269_vm9 = vmor %vm267_vm8, %vm268_vm7 }
 0x497   :  { %v264_v43 = vsub.f32 1.0, %v263_v41 }
 0x499   :  { %v265_v45 = vmul.f32 %v1571_v40, %v264_v43 }
 0x49b   :  { %v266_v47 = vadd.f32 %v1571_v40, %v265_v45 }
 0x49d   :  { %v270_v49 = vsel %vm269_vm9, %v1571_v40, %v266_v47 }
 0x49e   :  { %v275_v50 = vsel %vm272_vm10, %v274_v48, %v270_v49 }
 0x49f   :  { %v276_v51 = vmul.f32 %v1569_v35, %v275_v50 }
 0x4a0   :  { %v303_v53 = vpop.permute.xlu0 %302 }
 0x4a1   :  { %v308_v54 = vsel %vm232_vm5, %v303_v53, 0  ;;  %v277_v55 = vpack.c.bf16 %v276_v51, %v276_v51 }
 0x4a2   :  { %317 = vmatpush.bf16.xpose.msrb.mxu3 %v308_v54 }
 0x4a3   :  { %1400 = vmatmul.msk.bf16.vlgmr.msra.gmra.mxu3 %vm252_vm6, %v277_v55 }
 0x4a8   :  { %v447_v59 = vpop.permute.xlu0 %446 }
 0x4a9   :  { %v395_v57 = vpop.f32.mrf.mxu2 }
 0x4aa   :  { %463 = vmatpush.bf16.xpose.msra.mxu3 %v454_v56  ;;  %v396_v2 = vadd.f32 %v395_v57, %v1841_v0 }
 0x4ac   :  { %v399_v4 = vsel %vm252_vm6, %v396_v2, -inf }
 0x4b1   :  { %v397_v58 = vpop.f32.mrf.mxu2 }
 0x4b3   :  { %1401 = vmatmul.msk.bf16.vlgmr.msrb.gmra.mxu3 %vm232_vm5, %v301_v42 }
 0x4c3   :  { %1405 = vmatmul.msk.bf16.vlgmr.msra.gmra.mxu3 %vm232_vm5, %v447_v59 }
 0x526   :  { %v295_v60 = vpop.f32.mrf.mxu3 }
 0x527   :  { %299 = vst.msk [vmem:[#allocation2] sm:$0xff] %vm232_vm5, %v295_v60 }
 0x52e   :  { %v297_v61 = vpop.f32.mrf.mxu3 }
 0x536   :  { %v319_v62 = vpop.f32.mrf.mxu3 }
 0x537   :  { %v320_v63 = vadd.f32 %v319_v62, %v1816_v24 }
 0x539   :  { %v323_v1 = vsel %vm252_vm6, %v320_v63, -inf }
 0x53a   :  { %324 = vmax.xlane.f32.xlu1 %v323_v1 }
 0x53e   :  { %v321_v3 = vpop.f32.mrf.mxu3 }
 0x542   :  { %400 = vmax.xlane.f32.xlu1 %v399_v4 }
 0x546   :  { %v465_v5 = vpop.f32.mrf.mxu3 }
 0x547   :  { %v466_v6 = vadd.f32 %v465_v5, %v1841_v0 }
 0x549   :  { %v469_v7 = vsel %vm252_vm6, %v466_v6, -inf }
 0x54a   :  { %470 = vmax.xlane.f32.xlu0 %v469_v7 }
 0x54e   :  { %v467_v8 = vpop.f32.mrf.mxu3 }
 0x55b   :  { %494 = vrot.lane.b32.xlu1 %v1803_v18, %s1661_s1 }
 0x5ad   :  { %v325_v11 = vpop.xlane.xlu1 %324 }
 0x5ae   :  { %v326_v12 = vsub.f32 %v320_v63, %v325_v11 }
 0x5b0   :  { %v327_v13 = vmul.f32 1.442695, %v326_v12 }
 0x5b2   :  { %1572 = vpow2.f32 %v327_v13 }
 0x5b5   :  { %v401_v17 = vpop.xlane.xlu1 %400 }
 0x5b6   :  { %v402_v21 = vsub.f32 %v396_v2, %v401_v17 }
 0x5b8   :  { %v1573_v14 = vpop.eup %1572  ;;  %v403_v23 = vmul.f32 1.442695, %v402_v21  ;;  %v1520_v21 = vld [vmem:[%s2085_s6 + $0x8] sm:$0xff] }
 0x5b9   :  { %v329_v16 = vsel %vm252_vm6, %v1573_v14, 0.0  ;;  %549 = vmatpush.bf16.msra.mxu2 %v1520_v21  ;;  %v1523_v21 = vld [vmem:[%s2088_s9] sm:$0xff] }
 0x5ba   :  { %330 = vadd.xlane.f32.xlu2 %v329_v16 }
 0x5bd   :  { %v471_v19 = vpop.xlane.xlu0 %470 }
 0x5be   :  { %v472_v20 = vsub.f32 %v466_v6, %v471_v19 }
 0x5c0   :  { %v473_v22 = vmul.f32 1.442695, %v472_v20 }
 0x5c2   :  { %1574 = vpow2.f32 %v473_v22  ;;  %v1519_v22 = vld [vmem:[%s2085_s6] sm:$0xff] }
 0x5c3   :  { %1576 = vpow2.f32 %v403_v23  ;;  %550 = vmatpush.bf16.msra.mxu2 %v1519_v22 }
 0x5c8   :  { %v1575_v25 = vpop.eup %1574 }
 0x5c9   :  { %v475_v26 = vsel %vm252_vm6, %v1575_v25, 0.0  ;;  %v1852_v27 = vpop.eup %1576 }
 0x5ca   :  { %476 = vadd.xlane.f32.xlu0 %v475_v26  ;;  %v405_v28 = vsel %vm252_vm6, %v1852_v27, 0.0 }
 0x5cd   :  { %v495_v31 = vpop.permute.xlu1 %494 }
 0x5ce   :  { %v500_v36 = vsel %vm98_vm0, %v495_v31, 0 }
 0x5d2   :  { %348 = vrot.lane.b32.xlu2 %v1797_v15, %s1661_s1  ;;  %406 = vadd.xlane.f32.xlu0 %v405_v28  ;;  %v1882_v28 = vld [vmem:[%s2089_s10] sm:$0x3f] }
 0x5e6   :  { %424 = vrot.lane.b32.xlu0 %v1803_v18, %s1660_s22 }
 0x62d   :  { %v331_v29 = vpop.xlane.xlu2 %330 }
 0x62e   :  { %1578 = vrcp.f32 %v331_v29  ;;  %v343_v15 = vand.u32 2147483648, %v331_v29  ;;  %v341_v39 = vand.u32 2147483647, %v331_v29  ;;  %vm337_vm13 = vweird.f32 %v331_v29 }
 0x630   :  { %v344_v18 = vor.u32 1.1754944e-38, %v343_v15  ;;  %vm342_vm15 = vcmp.eq.f32.partialorder %v341_v39, 8.507059e+37 }
 0x634   :  { %v1579_v30 = vpop.eup %1578 }
 0x635   :  { %v333_v32 = vmul.f32 %v1579_v30, %v331_v29  ;;  %v349_v33 = vpop.permute.xlu2 %348  ;;  %vm338_vm11 = vweird.f32 %v1579_v30  ;;  %v527_v29 = vperm.slane %v1882_v28, 4 }
 0x636   :  { %v354_v35 = vsel %vm98_vm0, %v349_v33, 0  ;;  %vm339_vm14 = vmor %vm337_vm13, %vm338_vm11  ;;  %vm373_vm11 = vcmask 261248  }
 0x637   :  { %v334_v37 = vsub.f32 1.0, %v333_v32  ;;  %363 = vmatpush.bf16.msrb.mxu1 %v354_v35 }
 0x639   :  { %v335_v38 = vmul.f32 %v1579_v30, %v334_v37 }
 0x63b   :  { %509 = vmatpush.bf16.msra.mxu1 %v500_v36  ;;  %v336_v40 = vadd.f32 %v1579_v30, %v335_v38 }
 0x63d   :  { %v477_v41 = vpop.xlane.xlu0 %476  ;;  %v340_v42 = vsel %vm339_vm14, %v1579_v30, %v336_v40 }
 0x63e   :  { %1580 = vrcp.f32 %v477_v41  ;;  %v345_v43 = vsel %vm342_vm15, %v344_v18, %v340_v42  ;;  %v489_v50 = vand.u32 2147483648, %v477_v41  ;;  %v487_v52 = vand.u32 2147483647, %v477_v41 }
 0x63f   :  { %v346_v44 = vmul.f32 %v1573_v14, %v345_v43  ;;  %vm483_vm2 = vweird.f32 %v477_v41 }
 0x640   :  { %v490_v55 = vor.u32 1.1754944e-38, %v489_v50  ;;  %vm488_vm4 = vcmp.eq.f32.partialorder %v487_v52, 8.507059e+37 }
 0x641   :  { %v347_v45 = vpack.c.bf16 %v346_v44, %v346_v44 }
 0x643   :  { %1402 = vmatmul.msk.bf16.vlgmr.msrb.gmra.mxu1 %vm252_vm6, %v347_v45 }
 0x644   :  { %v1581_v46 = vpop.eup %1580 }
 0x645   :  { %v479_v47 = vmul.f32 %v1581_v46, %v477_v41  ;;  %v407_v48 = vpop.xlane.xlu0 %406  ;;  %vm484_vm1 = vweird.f32 %v1581_v46 }
 0x646   :  { %1582 = vrcp.f32 %v407_v48  ;;  %vm485_vm3 = vmor %vm483_vm2, %vm484_vm1  ;;  %v419_v61 = vand.u32 2147483648, %v407_v48  ;;  %v417_v63 = vand.u32 2147483647, %v407_v48  ;;  %vm413_vm8 = vweird.f32 %v407_v48 }
 0x647   :  { %v480_v49 = vsub.f32 1.0, %v479_v47 }
 0x648   :  { %v420_v3 = vor.u32 1.1754944e-38, %v419_v61  ;;  %vm418_vm10 = vcmp.eq.f32.partialorder %v417_v63, 8.507059e+37 }
 0x649   :  { %v481_v51 = vmul.f32 %v1581_v46, %v480_v49 }
 0x64b   :  { %v482_v53 = vadd.f32 %v1581_v46, %v481_v51 }
 0x64c   :  { %v1583_v54 = vpop.eup %1582 }
 0x64d   :  { %v486_v56 = vsel %vm485_vm3, %v1581_v46, %v482_v53  ;;  %v409_v57 = vmul.f32 %v1583_v54, %v407_v48  ;;  %vm414_vm7 = vweird.f32 %v1583_v54  ;;  %v1521_v48 = vld [vmem:[%s2086_s7] sm:$0xff] }
 0x64e   :  { %v491_v58 = vsel %vm488_vm4, %v490_v55, %v486_v56  ;;  %vm415_vm9 = vmor %vm413_vm8, %vm414_vm7  ;;  %vm699_vm4 = vcmask 523264  }
 0x64f   :  { %v492_v59 = vmul.f32 %v1575_v25, %v491_v58  ;;  %v410_v60 = vsub.f32 1.0, %v409_v57 }
 0x651   :  { %v411_v62 = vmul.f32 %v1583_v54, %v410_v60  ;;  %v493_v1 = vpack.c.bf16 %v492_v59, %v492_v59 }
 0x653   :  { %v412_v2 = vadd.f32 %v1583_v54, %v411_v62  ;;  %1406 = vmatmul.msk.bf16.vlgmr.msra.gmra.mxu1 %vm252_vm6, %v493_v1 }
 0x655   :  { %v416_v4 = vsel %vm415_vm9, %v1583_v54, %v412_v2  ;;  %v603_v2 = vperm.slane %v1882_v28, 0 }
 0x656   :  { %v421_v5 = vsel %vm418_vm10, %v420_v3, %v416_v4 }
 0x657   :  { %v422_v6 = vmul.f32 %v1852_v27, %v421_v5 }
 0x658   :  { %v425_v7 = vpop.permute.xlu0 %424 }
 0x659   :  { %v430_v8 = vsel %vm98_vm0, %v425_v7, 0  ;;  %v423_v11 = vpack.c.bf16 %v422_v6, %v422_v6  ;;  %v606_v6 = vperm.slane %v1882_v28, 1 }
 0x65a   :  { %439 = vmatpush.bf16.msrb.mxu0 %v430_v8 }
 0x65d   :  { %1404 = vmatmul.msk.bf16.vlgmr.msrb.gmra.mxu0 %vm252_vm6, %v423_v11 }
 0x6c0   :  { %v365_v12 = vpop.f32.mrf.mxu1 }
 0x6c1   :  { %370 = vrot.lane.b32.xlu2 %v365_v12, %s1662_s23 }
 0x6c8   :  { %v367_v13 = vpop.f32.mrf.mxu1 }
 0x6d0   :  { %v511_v14 = vpop.f32.mrf.mxu1 }
 0x6d1   :  { %516 = vrot.lane.b32.xlu1 %v511_v14, %s1662_s23 }
 0x6d8   :  { %v513_v16 = vpop.f32.mrf.mxu1 }
 0x6d9   :  { %v1526_v16 = vld [vmem:[%s2088_s9 + $0x18] sm:$0xff] }
 0x6da   :  { %v441_v17 = vpop.f32.mrf.mxu0  ;;  %707 = vmatpush.bf16.msrb.mxu3 %v1526_v16 }
 0x6db   :  { %445 = vst.msk [vmem:[#allocation2 + $0x8] sm:$0xff] %vm232_vm5, %v441_v17  ;;  %v1525_v17 = vld [vmem:[%s2088_s9 + $0x10] sm:$0xff] }
 0x6de   :  { %708 = vmatpush.bf16.msrb.mxu3 %v1525_v17 }
 0x6e2   :  { %v443_v19 = vpop.f32.mrf.mxu0 }
 0x6e3   :  { %v1524_v19 = vld [vmem:[%s2088_s9 + $0x8] sm:$0xff] }
 0x6e4   :  { %709 = vmatpush.bf16.msrb.mxu3 %v1524_v19 }
 0x6e8   :  { %710 = vmatpush.bf16.msrb.mxu3 %v1523_v21 }
 0x71b   :  { %v371_v20 = vpop.permute.xlu2 %370 }
 0x71c   :  { %374 = vst.msk [vmem:[#allocation2] sm:$0xff] %vm373_vm11, %v371_v20  ;;  %v1559_v20 = vld [vmem:[%s2087_s8] ss:$0 sm:$0xff] }
 0x723   :  { %v520_v25 = vld [vmem:[#allocation2] sm:$0xff] }
 0x743   :  { %v517_v23 = vpop.permute.xlu1 %516 }
 0x744   :  { %519 = vst.msk [vmem:[#allocation2 + $0x8] sm:$0xff] %vm373_vm11, %v517_v23 }
 0x74b   :  { %v521_v26 = vld [vmem:[#allocation2 + $0x8] sm:$0xff] }
 0x74c   :  { %v522_v27 = vpack.c.bf16 %v521_v26, %v520_v25 }
 0x74e   :  { %1415 = vmatmul.msk.bf16.vlgmr.msra.gmra.mxu2 %vm127_vm12, %v522_v27 }
 0x7d1   :  { %v552_v30 = vpop.f32.mrf.mxu2 }
 0x7d2   :  { %v553_v31 = vadd.f32 %v552_v30, %v527_v29 }
 0x7d4   :  { %v557_v32 = vadd.f32 %v553_v31, %v1787_v9 }
 0x7d6   :  { %v559_v33 = vsel %vm127_vm12, %v557_v32, 0.0 }
 0x7d7   :  { %560 = vadd.xlane.f32.xlu2 %v559_v33 }
 0x7d9   :  { %v554_v35 = vpop.f32.mrf.mxu2 }
 0x7da   :  { %v555_v36 = vadd.f32 %v554_v35, %v527_v29 }
 0x7dc   :  { %v558_v37 = vadd.f32 %v555_v36, %v1789_v10  ;;  %v1522_v10 = vld [vmem:[%s2086_s7 + $0x8] sm:$0xff] }
 0x7dd   :  { %639 = vmatpush.bf16.msra.mxu0 %v1522_v10 }
 0x7de   :  { %v562_v38 = vsel %vm127_vm12, %v558_v37, 0.0 }
 0x7df   :  { %563 = vadd.xlane.f32.xlu0 %v562_v38 }
 0x7e1   :  { %640 = vmatpush.bf16.msra.mxu0 %v1521_v48 }
 0x84a   :  { %v561_v15 = vpop.xlane.xlu2 %560 }
 0x84b   :  { %v565_v39 = vmul.f32 %v561_v15, %v1767_v34 }
 0x84d   :  { %v567_v40 = vsub.f32 %v557_v32, %v565_v39 }
 0x84f   :  { %v569_v18 = vmul.f32 %v567_v40, %v567_v40 }
 0x851   :  { %v571_v41 = vsel %vm127_vm12, %v569_v18, 0.0 }
 0x852   :  { %v564_v42 = vpop.xlane.xlu0 %563  ;;  %572 = vadd.xlane.f32.xlu1 %v571_v41 }
 0x853   :  { %v566_v9 = vmul.f32 %v564_v42, %v1767_v34 }
 0x855   :  { %v568_v43 = vsub.f32 %v558_v37, %v566_v9 }
 0x857   :  { %v570_v44 = vmul.f32 %v568_v43, %v568_v43 }
 0x859   :  { %v574_v45 = vsel %vm127_vm12, %v570_v44, 0.0 }
 0x85a   :  { %575 = vadd.xlane.f32.xlu2 %v574_v45  ;;  %v674_v45 = vperm.slane %v1882_v28, 5 }
 0x8c5   :  { %v573_v46 = vpop.xlane.xlu1 %572 }
 0x8c6   :  { %v577_v47 = vmul.f32 %v573_v46, %v1767_v34 }
 0x8c8   :  { %v579_v49 = vadd.f32 1e-12, %v577_v47 }
 0x8ca   :  { %1584 = vrsqrt.f32 %v579_v49  ;;  %vm587_vm14 = vweird.f32 %v579_v49 }
 0x8cd   :  { %v576_v50 = vpop.xlane.xlu2 %575 }
 0x8ce   :  { %v578_v51 = vmul.f32 %v576_v50, %v1767_v34 }
 0x8d0   :  { %v1585_v52 = vpop.eup %1584  ;;  %v580_v53 = vadd.f32 1e-12, %v578_v51 }
 0x8d1   :  { %v582_v54 = vmul.f32 %v1585_v52, %v579_v49  ;;  %vm588_vm13 = vweird.f32 %v1585_v52 }
 0x8d2   :  { %1586 = vrsqrt.f32 %v580_v53  ;;  %vm589_vm15 = vmor %vm587_vm14, %vm588_vm13  ;;  %vm597_vm2 = vweird.f32 %v580_v53 }
 0x8d3   :  { %v583_v55 = vmul.f32 %v1585_v52, %v582_v54 }
 0x8d5   :  { %v584_v56 = vmul.f32 0.5, %v583_v55 }
 0x8d7   :  { %v585_v57 = vsub.f32 1.5, %v584_v56 }
 0x8d8   :  { %v1587_v58 = vpop.eup %1586 }
 0x8d9   :  { %v586_v59 = vmul.f32 %v1585_v52, %v585_v57  ;;  %v592_v60 = vmul.f32 %v1587_v58, %v580_v53  ;;  %vm598_vm1 = vweird.f32 %v1587_v58 }
 0x8da   :  { %vm599_vm3 = vmor %vm597_vm2, %vm598_vm1 }
 0x8db   :  { %v593_v61 = vmul.f32 %v1587_v58, %v592_v60  ;;  %v590_v62 = vsel %vm589_vm15, %v1585_v52, %v586_v59 }
 0x8dc   :  { %v601_v3 = vmul.f32 %v590_v62, %v567_v40 }
 0x8dd   :  { %v594_v63 = vmul.f32 0.5, %v593_v61 }
 0x8de   :  { %v604_v7 = vmul.f32 %v603_v2, %v601_v3  ;;  %v1527_v3 = vld [vmem:[%s2083_s4 + $0x10] sm:$0xff] }
 0x8df   :  { %v595_v1 = vsub.f32 1.5, %v594_v63  ;;  %v1528_v63 = vld [vmem:[%s2083_s4 + $0x18] sm:$0xff] }
 0x8e0   :  { %v607_v12 = vadd.f32 %v606_v6, %v604_v7  ;;  %803 = vmatpush.bf16.msrb.mxu1 %v1528_v63 }
 0x8e1   :  { %v596_v4 = vmul.f32 %v1587_v58, %v595_v1 }
 0x8e3   :  { %v600_v5 = vsel %vm599_vm3, %v1587_v58, %v596_v4 }
 0x8e4   :  { %v602_v8 = vmul.f32 %v600_v5, %v568_v43  ;;  %804 = vmatpush.bf16.msrb.mxu1 %v1527_v3 }
 0x8e6   :  { %v605_v11 = vmul.f32 %v603_v2, %v602_v8 }
 0x8e8   :  { %v608_v13 = vadd.f32 %v606_v6, %v605_v11 }
 0x8ea   :  { %v609_v14 = vpack.c.bf16 %v608_v13, %v607_v12 }
 0x8ec   :  { %1424 = vmatmul.msk.bf16.vlgmr.msra.gmra.mxu0 %vm127_vm12, %v609_v14 }
 0x969   :  { %v642_v22 = vpop.f32.mrf.mxu0 }
 0x96a   :  { %v643_v23 = vadd.f32 %v1559_v20, %v642_v22 }
 0x96c   :  { %v647_v25 = vmul.f32 %v643_v23, %v643_v23 }
 0x96e   :  { %v649_v26 = vmul.f32 %v647_v25, %v643_v23  ;;  %v763_v25 = vperm.slane %v1882_v28, 2 }
 0x970   :  { %v651_v27 = vmul.f32 0.044715, %v649_v26 }
 0x971   :  { %v644_v29 = vpop.f32.mrf.mxu0 }
 0x972   :  { %v653_v30 = vadd.f32 %v651_v27, %v643_v23  ;;  %v645_v31 = vadd.f32 %v1559_v20, %v644_v29 }
 0x974   :  { %v655_v32 = vmul.f32 0.7978846, %v653_v30  ;;  %v648_v33 = vmul.f32 %v645_v31, %v645_v31  ;;  %v766_v30 = vperm.slane %v1882_v28, 3 }
 0x976   :  { %v650_v35 = vmul.f32 %v648_v33, %v645_v31  ;;  %1588 = vtanh.f32 %v655_v32 }
 0x978   :  { %v652_v36 = vmul.f32 0.044715, %v650_v35 }
 0x97a   :  { %v654_v37 = vadd.f32 %v652_v36, %v645_v31 }
 0x97c   :  { %v656_v38 = vmul.f32 0.7978846, %v654_v37  ;;  %v1589_v15 = vpop.eup %1588 }
 0x97d   :  { %v659_v39 = vadd.f32 1.0, %v1589_v15 }
 0x97e   :  { %1590 = vtanh.f32 %v656_v38  ;;  %v1560_v38 = vld [vmem:[%s2084_s5 + $0x1] ss:$0 sm:$0xff] }
 0x97f   :  { %v661_v18 = vmul.f32 0.5, %v659_v39 }
 0x981   :  { %v663_v9 = vmul.f32 %v661_v18, %v643_v23 }
 0x984   :  { %v1591_v40 = vpop.eup %1590 }
 0x985   :  { %v660_v41 = vadd.f32 1.0, %v1591_v40 }
 0x987   :  { %v662_v42 = vmul.f32 0.5, %v660_v41 }
 0x989   :  { %v664_v43 = vmul.f32 %v662_v42, %v645_v31 }
 0x98b   :  { %v665_v44 = vpack.c.bf16 %v664_v43, %v663_v9 }
 0x98d   :  { %1441 = vmatmul.msk.bf16.vlgmr.msrb.gmra.mxu3 %vm699_vm4, %v665_v44 }
 0xa10   :  { %v712_v10 = vpop.f32.mrf.mxu3 }
 0xa11   :  { %v713_v46 = vadd.f32 %v712_v10, %v674_v45 }
 0xa13   :  { %v717_v47 = vadd.f32 %v713_v46, %v607_v12 }
 0xa15   :  { %v719_v48 = vsel %vm127_vm12, %v717_v47, 0.0 }
 0xa16   :  { %720 = vadd.xlane.f32.xlu0 %v719_v48 }
 0xa18   :  { %v714_v49 = vpop.f32.mrf.mxu3 }
 0xa19   :  { %v715_v50 = vadd.f32 %v714_v49, %v674_v45 }
 0xa1b   :  { %v718_v51 = vadd.f32 %v715_v50, %v608_v13 }
 0xa1d   :  { %v722_v52 = vsel %vm127_vm12, %v718_v51, 0.0 }
 0xa1e   :  { %723 = vadd.xlane.f32.xlu1 %v722_v52 }
 0xa89   :  { %v721_v53 = vpop.xlane.xlu0 %720 }
 0xa8a   :  { %v725_v54 = vmul.f32 %v721_v53, %v1767_v34 }
 0xa8c   :  { %v727_v55 = vsub.f32 %v717_v47, %v725_v54 }
 0xa8e   :  { %v729_v56 = vmul.f32 %v727_v55, %v727_v55 }
 0xa90   :  { %v731_v57 = vsel %vm127_vm12, %v729_v56, 0.0 }
 0xa91   :  { %v724_v58 = vpop.xlane.xlu1 %723  ;;  %732 = vadd.xlane.f32.xlu2 %v731_v57 }
 0xa92   :  { %v726_v59 = vmul.f32 %v724_v58, %v1767_v34 }
 0xa94   :  { %v728_v60 = vsub.f32 %v718_v51, %v726_v59 }
 0xa96   :  { %v730_v61 = vmul.f32 %v728_v60, %v728_v60 }
 0xa98   :  { %v734_v62 = vsel %vm127_vm12, %v730_v61, 0.0 }
 0xa99   :  { %735 = vadd.xlane.f32.xlu0 %v734_v62 }
 0xb04   :  { %v733_v1 = vpop.xlane.xlu2 %732 }
 0xb05   :  { %v737_v2 = vmul.f32 %v733_v1, %v1767_v34 }
 0xb07   :  { %v739_v4 = vadd.f32 1e-12, %v737_v2 }
 0xb09   :  { %1592 = vrsqrt.f32 %v739_v4  ;;  %vm747_vm8 = vweird.f32 %v739_v4 }
 0xb0c   :  { %v736_v5 = vpop.xlane.xlu0 %735 }
 0xb0d   :  { %v738_v6 = vmul.f32 %v736_v5, %v1767_v34 }
 0xb0f   :  { %v1593_v7 = vpop.eup %1592  ;;  %v740_v8 = vadd.f32 1e-12, %v738_v6 }
 0xb10   :  { %v742_v11 = vmul.f32 %v1593_v7, %v739_v4  ;;  %vm748_vm7 = vweird.f32 %v1593_v7 }
 0xb11   :  { %1594 = vrsqrt.f32 %v740_v8  ;;  %vm749_vm9 = vmor %vm747_vm8, %vm748_vm7  ;;  %vm757_vm13 = vweird.f32 %v740_v8 }
 0xb12   :  { %v743_v12 = vmul.f32 %v1593_v7, %v742_v11 }
 0xb14   :  { %v744_v13 = vmul.f32 0.5, %v743_v12 }
 0xb16   :  { %v745_v14 = vsub.f32 1.5, %v744_v13 }
 0xb17   :  { %v1595_v16 = vpop.eup %1594 }
 0xb18   :  { %v746_v17 = vmul.f32 %v1593_v7, %v745_v14  ;;  %v752_v19 = vmul.f32 %v1595_v16, %v740_v8  ;;  %vm758_vm10 = vweird.f32 %v1595_v16 }
 0xb19   :  { %vm759_vm14 = vmor %vm757_vm13, %vm758_vm10 }
 0xb1a   :  { %v753_v20 = vmul.f32 %v1595_v16, %v752_v19  ;;  %v750_v21 = vsel %vm749_vm9, %v1593_v7, %v746_v17 }
 0xb1b   :  { %v761_v26 = vmul.f32 %v750_v21, %v727_v55 }
 0xb1c   :  { %v754_v22 = vmul.f32 0.5, %v753_v20 }
 0xb1d   :  { %v764_v31 = vmul.f32 %v763_v25, %v761_v26 }
 0xb1e   :  { %v755_v23 = vsub.f32 1.5, %v754_v22 }
 0xb1f   :  { %v1937_v35 = vadd.f32 %v766_v30, %v764_v31 }
 0xb20   :  { %v756_v27 = vmul.f32 %v1595_v16, %v755_v23 }
 0xb22   :  { %v760_v29 = vsel %vm759_vm14, %v1595_v16, %v756_v27 }
 0xb23   :  { %v762_v32 = vmul.f32 %v760_v29, %v728_v60 }
 0xb25   :  { %v765_v33 = vmul.f32 %v763_v25, %v762_v32 }
 0xb27   :  { %v1939_v36 = vadd.f32 %v766_v30, %v765_v33 }
 0xb29   :  { %v771_v37 = vpack.c.bf16 %v1939_v36, %v1937_v35 }
 0xb2b   :  { %1456 = vmatmul.msk.bf16.vlgmr.msrb.gmra.mxu1 %vm127_vm12, %v771_v37 }
 0xba8   :  { %v806_v15 = vpop.f32.mrf.mxu1 }
 0xba9   :  { %v807_v39 = vadd.f32 %v1560_v38, %v806_v15 }
 0xbab   :  { %v1947_v40 = vpack.c.bf16 %v807_v39, %v807_v39 }
 0xbad   :  { %881 = vrot.lane.b32.xlu2 %v1947_v40, %s1658_s3  ;;  %883 = vrot.lane.b32.xlu1 %v1947_v40, %s1659_s19 }
 0xbb0   :  { %v808_v28 = vpop.f32.mrf.mxu1 }
 0xbb1   :  { %v809_v18 = vadd.f32 %v1560_v38, %v808_v28 }
 0xbb3   :  { %v955_v41 = vpack.c.bf16 %v809_v18, %v809_v18 }
 0xbb5   :  { %1027 = vrot.lane.b32.xlu0 %v955_v41, %s1659_s19  ;;  %957 = vrot.lane.b32.xlu2 %v955_v41, %s1657_s18 }
 0xbb6   :  { %1025 = vrot.lane.b32.xlu1 %v955_v41, %s1658_s3 }
 0xbbd   :  { %813 = vrot.lane.b32.xlu0 %v1947_v40, %s1657_s18 }
 0xc07   :  { %v882_v43 = vpop.permute.xlu2 %881 }
 0xc0f   :  { %v958_v10 = vpop.permute.xlu2 %957 }
 0xc10   :  { %v963_v48 = vsel %vm232_vm5, %v958_v10, 0 }
 0xc1f   :  { %v884_v42 = vpop.permute.xlu1 %883 }
 0xc20   :  { %v889_v9 = vsel %vm232_vm5, %v884_v42, 0 }
 0xc21   :  { %898 = vmatpush.bf16.xpose.msra.mxu3 %v889_v9 }
 0xc27   :  { %v1028_v44 = vpop.permute.xlu0 %1027 }
 0xc28   :  { %v1033_v45 = vsel %vm232_vm5, %v1028_v44, 0  ;;  %1459 = vmatmul.msk.bf16.vlgmr.msra.gmra.mxu3 %vm232_vm5, %v882_v43  ;;  %v1026_v49 = vpop.permute.xlu1 %1025 }
 0xc29   :  { %1042 = vmatpush.bf16.xpose.msrb.mxu3 %v1033_v45 }
 0xc2f   :  { %v814_v46 = vpop.permute.xlu0 %813 }
 0xc30   :  { %v819_v47 = vsel %vm232_vm5, %v814_v46, 0 }
 0xc31   :  { %828 = vmatpush.bf16.xpose.msrb.mxu2 %v819_v47 }
 0xc38   :  { %1457 = vmatmul.msk.bf16.vlgmr.msrb.gmra.mxu2 %vm232_vm5, %v1947_v40  ;;  %1463 = vmatmul.msk.bf16.vlgmr.msrb.gmra.mxu3 %vm232_vm5, %v1026_v49 }
 0xc39   :  { %972 = vmatpush.bf16.xpose.msra.mxu2 %v963_v48 }
 0xc48   :  { %1461 = vmatmul.msk.bf16.vlgmr.msra.gmra.mxu2 %vm232_vm5, %v955_v41 }
 0xcab   :  { %v900_v50 = vpop.f32.mrf.mxu3 }
 0xcac   :  { %v901_v51 = vadd.f32 %v900_v50, %v1816_v24 }
 0xcae   :  { %v904_v52 = vsel %vm252_vm6, %v901_v51, -inf }
 0xcaf   :  { %905 = vmax.xlane.f32.xlu1 %v904_v52 }
 0xcb3   :  { %v902_v53 = vpop.f32.mrf.mxu3 }
 0xcbb   :  { %v830_v54 = vpop.f32.mrf.mxu2  ;;  %v1044_v55 = vpop.f32.mrf.mxu3 }
 0xcbc   :  { %v831_v56 = vadd.f32 %v830_v54, %v1816_v24  ;;  %v1045_v57 = vadd.f32 %v1044_v55, %v1841_v0 }
 0xcbe   :  { %v834_v58 = vsel %vm252_vm6, %v831_v56, -inf  ;;  %v1048_v59 = vsel %vm252_vm6, %v1045_v57, -inf }
 0xcbf   :  { %835 = vmax.xlane.f32.xlu2 %v834_v58  ;;  %1049 = vmax.xlane.f32.xlu0 %v1048_v59 }
 0xcc3   :  { %v832_v60 = vpop.f32.mrf.mxu2  ;;  %v1046_v61 = vpop.f32.mrf.mxu3 }
 0xccb   :  { %v974_v62 = vpop.f32.mrf.mxu2 }
 0xccc   :  { %v975_v63 = vadd.f32 %v974_v62, %v1841_v0 }
 0xcce   :  { %v978_v1 = vsel %vm252_vm6, %v975_v63, -inf }
 0xccf   :  { %979 = vmax.xlane.f32.xlu0 %v978_v1 }
 0xcd3   :  { %v976_v2 = vpop.f32.mrf.mxu2 }
 0xce3   :  { %1073 = vrot.lane.b32.xlu0 %v955_v41, %s1661_s1 }
 0xceb   :  { %1003 = vrot.lane.b32.xlu0 %v955_v41, %s1660_s22 }
 0xd22   :  { %v906_v24 = vpop.xlane.xlu1 %905 }
 0xd23   :  { %v907_v3 = vsub.f32 %v901_v51, %v906_v24 }
 0xd25   :  { %v908_v4 = vmul.f32 1.442695, %v907_v3 }
 0xd27   :  { %1596 = vpow2.f32 %v908_v4 }
 0xd2d   :  { %v1597_v5 = vpop.eup %1596 }
 0xd2e   :  { %v910_v6 = vsel %vm252_vm6, %v1597_v5, 0.0 }
 0xd2f   :  { %911 = vadd.xlane.f32.xlu1 %v910_v6 }
 0xd32   :  { %v836_v7 = vpop.xlane.xlu2 %835  ;;  %v1050_v8 = vpop.xlane.xlu0 %1049 }
 0xd33   :  { %v837_v11 = vsub.f32 %v831_v56, %v836_v7  ;;  %v1051_v12 = vsub.f32 %v1045_v57, %v1050_v8 }
 0xd35   :  { %v838_v0 = vmul.f32 1.442695, %v837_v11  ;;  %v1052_v13 = vmul.f32 1.442695, %v1051_v12 }
 0xd37   :  { %1598 = vpow2.f32 %v838_v0 }
 0xd38   :  { %1600 = vpow2.f32 %v1052_v13 }
 0xd3d   :  { %v1978_v14 = vpop.eup %1598 }
 0xd3e   :  { %v840_v16 = vsel %vm252_vm6, %v1978_v14, 0.0  ;;  %v1982_v19 = vpop.eup %1600 }
 0xd3f   :  { %841 = vadd.xlane.f32.xlu2 %v840_v16  ;;  %v1054_v22 = vsel %vm252_vm6, %v1982_v19, 0.0 }
 0xd42   :  { %v980_v17 = vpop.xlane.xlu0 %979 }
 0xd43   :  { %v981_v20 = vsub.f32 %v975_v63, %v980_v17 }
 0xd45   :  { %v982_v21 = vmul.f32 1.442695, %v981_v20 }
 0xd47   :  { %1602 = vpow2.f32 %v982_v21  ;;  %1055 = vadd.xlane.f32.xlu2 %v1054_v22 }
 0xd48   :  { %929 = vrot.lane.b32.xlu1 %v1947_v40, %s1661_s1 }
 0xd4d   :  { %v1988_v23 = vpop.eup %1602 }
 0xd4e   :  { %v984_v25 = vsel %vm252_vm6, %v1988_v23, 0.0 }
 0xd4f   :  { %985 = vadd.xlane.f32.xlu2 %v984_v25 }
 0xd67   :  { %859 = vrot.lane.b32.xlu2 %v1947_v40, %s1660_s22  ;;  %v1074_v40 = vpop.permute.xlu0 %1073 }
 0xd68   :  { %v1079_v10 = vsel %vm98_vm0, %v1074_v40, 0 }
 0xd6f   :  { %v1004_v63 = vpop.permute.xlu0 %1003 }
 0xd70   :  { %v1009_v7 = vsel %vm98_vm0, %v1004_v63, 0 }
 0xda2   :  { %v912_v26 = vpop.xlane.xlu1 %911 }
 0xda3   :  { %1604 = vrcp.f32 %v912_v26  ;;  %v924_v33 = vand.u32 2147483648, %v912_v26  ;;  %vm918_vm1 = vweird.f32 %v912_v26  ;;  %v922_v37 = vand.u32 2147483647, %v912_v26 }
 0xda5   :  { %v925_v39 = vor.u32 1.1754944e-38, %v924_v33  ;;  %vm923_vm3 = vcmp.eq.f32.partialorder %v922_v37, 8.507059e+37 }
 0xda9   :  { %v1605_v27 = vpop.eup %1604 }
 0xdaa   :  { %v914_v29 = vmul.f32 %v1605_v27, %v912_v26  ;;  %vm919_vm15 = vweird.f32 %v1605_v27 }
 0xdab   :  { %vm920_vm2 = vmor %vm918_vm1, %vm919_vm15 }
 0xdac   :  { %v915_v30 = vsub.f32 1.0, %v914_v29 }
 0xdae   :  { %v916_v31 = vmul.f32 %v1605_v27, %v915_v30 }
 0xdb0   :  { %v917_v32 = vadd.f32 %v1605_v27, %v916_v31 }
 0xdb2   :  { %v842_v38 = vpop.xlane.xlu2 %841  ;;  %v921_v15 = vsel %vm920_vm2, %v1605_v27, %v917_v32 }
 0xdb3   :  { %1606 = vrcp.f32 %v842_v38  ;;  %v926_v28 = vsel %vm923_vm3, %v925_v39, %v921_v15  ;;  %v854_v49 = vand.u32 2147483648, %v842_v38  ;;  %vm848_vm8 = vweird.f32 %v842_v38 }
 0xdb4   :  { %v927_v41 = vmul.f32 %v1597_v5, %v926_v28  ;;  %v852_v51 = vand.u32 2147483647, %v842_v38 }
 0xdb5   :  { %v855_v55 = vor.u32 1.1754944e-38, %v854_v49 }
 0xdb6   :  { %v928_v47 = vpack.c.bf16 %v927_v41, %v927_v41  ;;  %vm853_vm10 = vcmp.eq.f32.partialorder %v852_v51, 8.507059e+37  ;;  %v2021_v41 = vld [vmem:[%s2089_s10 + $0x8] sm:$0x3f] }
 0xdb9   :  { %v1607_v18 = vpop.eup %1606 }
 0xdba   :  { %v844_v42 = vmul.f32 %v1607_v18, %v842_v38  ;;  %v1056_v9 = vpop.xlane.xlu2 %1055  ;;  %v930_v43 = vpop.permute.xlu1 %929  ;;  %vm849_vm7 = vweird.f32 %v1607_v18  ;;  %v1529_v38 = vld [vmem:[%s2085_s6 + $0x10] sm:$0xff] }
 0xdbb   :  { %1608 = vrcp.f32 %v1056_v9  ;;  %v935_v45 = vsel %vm98_vm0, %v930_v43, 0  ;;  %vm850_vm9 = vmor %vm848_vm8, %vm849_vm7  ;;  %v1068_v57 = vand.u32 2147483648, %v1056_v9  ;;  %v1066_v60 = vand.u32 2147483647, %v1056_v9 }
 0xdbc   :  { %v845_v44 = vsub.f32 1.0, %v844_v42  ;;  %944 = vmatpush.bf16.msra.mxu1 %v935_v45  ;;  %vm1062_vm14 = vweird.f32 %v1056_v9  ;;  %v1107_v42 = vperm.slane %v2021_v41, 4 }
 0xdbd   :  { %v1069_v2 = vor.u32 1.1754944e-38, %v1068_v57  ;;  %vm1067_vm1 = vcmp.eq.f32.partialorder %v1066_v60, 8.507059e+37 }
 0xdbe   :  { %v846_v46 = vmul.f32 %v1607_v18, %v845_v44 }
 0xdbf   :  { %1460 = vmatmul.msk.bf16.vlgmr.msra.gmra.mxu1 %vm252_vm6, %v928_v47 }
 0xdc0   :  { %1088 = vmatpush.bf16.msrb.mxu1 %v1079_v10  ;;  %v847_v48 = vadd.f32 %v1607_v18, %v846_v46 }
 0xdc1   :  { %v1609_v50 = vpop.eup %1608 }
 0xdc2   :  { %v1058_v52 = vmul.f32 %v1609_v50, %v1056_v9  ;;  %v986_v53 = vpop.xlane.xlu2 %985  ;;  %v851_v54 = vsel %vm850_vm9, %v1607_v18, %v847_v48  ;;  %vm1063_vm13 = vweird.f32 %v1609_v50 }
 0xdc3   :  { %1610 = vrcp.f32 %v986_v53  ;;  %v856_v58 = vsel %vm853_vm10, %v855_v55, %v851_v54  ;;  %vm1064_vm15 = vmor %vm1062_vm14, %vm1063_vm13  ;;  %v998_v16 = vand.u32 2147483648, %v986_v53  ;;  %vm992_vm3 = vweird.f32 %v986_v53 }
 0xdc4   :  { %v1059_v56 = vsub.f32 1.0, %v1058_v52  ;;  %v857_v1 = vmul.f32 %v1978_v14, %v856_v58  ;;  %v996_v17 = vand.u32 2147483647, %v986_v53 }
 0xdc5   :  { %v999_v21 = vor.u32 1.1754944e-38, %v998_v16 }
 0xdc6   :  { %v1060_v59 = vmul.f32 %v1609_v50, %v1059_v56  ;;  %v858_v0 = vpack.c.bf16 %v857_v1, %v857_v1 }
 0xdc8   :  { %v1061_v61 = vadd.f32 %v1609_v50, %v1060_v59 }
 0xdc9   :  { %v1611_v62 = vpop.eup %1610 }
 0xdca   :  { %v1065_v24 = vsel %vm1064_vm15, %v1609_v50, %v1061_v61  ;;  %v988_v3 = vmul.f32 %v1611_v62, %v986_v53  ;;  %v860_v4 = vpop.permute.xlu2 %859  ;;  %vm993_vm2 = vweird.f32 %v1611_v62  ;;  %v1531_v61 = vld [vmem:[%s2086_s7 + $0x10] sm:$0xff] }
 0xdcb   :  { %v1070_v5 = vsel %vm1067_vm1, %v1069_v2, %v1065_v24  ;;  %v865_v6 = vsel %vm98_vm0, %v860_v4, 0  ;;  %vm994_vm7 = vmor %vm992_vm3, %vm993_vm2  ;;  %vm997_vm0 = vcmp.eq.f32.partialorder %v996_v17, 8.507059e+37  ;;  %vm1353_vm1 = vcmask 253952  }
 0xdcc   :  { %v1071_v8 = vmul.f32 %v1982_v19, %v1070_v5  ;;  %v989_v11 = vsub.f32 1.0, %v988_v3  ;;  %874 = vmatpush.bf16.msrb.mxu0 %v865_v6  ;;  %vm1361_vm3 = vcmask 7168  }
 0xdce   :  { %v990_v12 = vmul.f32 %v1611_v62, %v989_v11  ;;  %v1072_v13 = vpack.c.bf16 %v1071_v8, %v1071_v8 }
 0xdcf   :  { %1458 = vmatmul.msk.bf16.vlgmr.msrb.gmra.mxu0 %vm252_vm6, %v858_v0 }
 0xdd0   :  { %1018 = vmatpush.bf16.msra.mxu0 %v1009_v7  ;;  %v991_v14 = vadd.f32 %v1611_v62, %v990_v12  ;;  %1464 = vmatmul.msk.bf16.vlgmr.msrb.gmra.mxu1 %vm252_vm6, %v1072_v13 }
 0xdd2   :  { %v995_v20 = vsel %vm994_vm7, %v1611_v62, %v991_v14  ;;  %v1183_v14 = vperm.slane %v2021_v41, 0  ;;  %vm1367_vm7 = vcmask 8192  }
 0xdd3   :  { %v1000_v19 = vsel %vm997_vm0, %v999_v21, %v995_v20  ;;  %v1186_v21 = vperm.slane %v2021_v41, 1 }
 0xdd4   :  { %v1001_v22 = vmul.f32 %v1988_v23, %v1000_v19  ;;  %v1530_v23 = vld [vmem:[%s2085_s6 + $0x18] sm:$0xff] }
 0xdd5   :  { %1129 = vmatpush.bf16.msrb.mxu2 %v1530_v23  ;;  %v1533_v23 = vld [vmem:[%s2088_s9 + $0x20] sm:$0xff] }
 0xdd6   :  { %v1002_v25 = vpack.c.bf16 %v1001_v22, %v1001_v22 }
 0xdd9   :  { %1130 = vmatpush.bf16.msrb.mxu2 %v1529_v38 }
 0xddf   :  { %1462 = vmatmul.msk.bf16.vlgmr.msra.gmra.mxu0 %vm252_vm6, %v1002_v25 }
 0xe3c   :  { %v946_v26 = vpop.f32.mrf.mxu1 }
 0xe3d   :  { %951 = vrot.lane.b32.xlu1 %v946_v26, %s1662_s23 }
 0xe44   :  { %v948_v27 = vpop.f32.mrf.mxu1 }
 0xe4c   :  { %v876_v29 = vpop.f32.mrf.mxu0 }
 0xe4d   :  { %880 = vst.msk [vmem:[#allocation2] sm:$0xff] %vm232_vm5, %v876_v29  ;;  %v1090_v30 = vpop.f32.mrf.mxu1 }
 0xe4e   :  { %1095 = vrot.lane.b32.xlu0 %v1090_v30, %s1662_s23  ;;  %v1536_v30 = vld [vmem:[%s2088_s9 + $0x38] sm:$0xff] }
 0xe4f   :  { %1289 = vmatpush.bf16.msra.mxu3 %v1536_v30 }
 0xe54   :  { %v878_v31 = vpop.f32.mrf.mxu0 }
 0xe55   :  { %v1092_v32 = vpop.f32.mrf.mxu1  ;;  %v1535_v31 = vld [vmem:[%s2088_s9 + $0x30] sm:$0xff] }
 0xe56   :  { %1290 = vmatpush.bf16.msra.mxu3 %v1535_v31  ;;  %v1534_v32 = vld [vmem:[%s2088_s9 + $0x28] sm:$0xff] }
 0xe5a   :  { %1291 = vmatpush.bf16.msra.mxu3 %v1534_v32 }
 0xe5c   :  { %v1020_v33 = vpop.f32.mrf.mxu0 }
 0xe5d   :  { %1024 = vst.msk [vmem:[#allocation2 + $0x8] sm:$0xff] %vm232_vm5, %v1020_v33  ;;  %v1561_v33 = vld [vmem:[%s2087_s8 + $0x1] ss:$0 sm:$0xff] }
 0xe5e   :  { %1292 = vmatpush.bf16.msra.mxu3 %v1533_v23 }
 0xe64   :  { %v1022_v37 = vpop.f32.mrf.mxu0 }
 0xeaf   :  { %v952_v15 = vpop.permute.xlu1 %951 }
 0xeb0   :  { %954 = vst.msk [vmem:[#allocation2] sm:$0xff] %vm373_vm11, %v952_v15 }
 0xeb7   :  { %v1099_v28 = vld [vmem:[#allocation2] sm:$0xff] }
 0xec0   :  { %v1096_v39 = vpop.permute.xlu0 %1095 }
 0xec1   :  { %1098 = vst.msk [vmem:[#allocation2 + $0x8] sm:$0xff] %vm373_vm11, %v1096_v39 }
 0xec8   :  { %v1100_v18 = vld [vmem:[#allocation2 + $0x8] sm:$0xff] }
 0xec9   :  { %v1101_v40 = vpack.c.bf16 %v1100_v18, %v1099_v28 }
 0xecb   :  { %1477 = vmatmul.msk.bf16.vlgmr.msrb.gmra.mxu2 %vm127_vm12, %v1101_v40 }
 0xf4e   :  { %v1132_v9 = vpop.f32.mrf.mxu2 }
 0xf4f   :  { %v1133_v43 = vadd.f32 %v1132_v9, %v1107_v42 }
 0xf51   :  { %v1137_v44 = vadd.f32 %v1133_v43, %v1937_v35 }
 0xf53   :  { %v1139_v45 = vsel %vm127_vm12, %v1137_v44, 0.0 }
 0xf54   :  { %1140 = vadd.xlane.f32.xlu1 %v1139_v45 }
 0xf56   :  { %v1134_v10 = vpop.f32.mrf.mxu2 }
 0xf57   :  { %v1135_v46 = vadd.f32 %v1134_v10, %v1107_v42 }
 0xf59   :  { %v1138_v47 = vadd.f32 %v1135_v46, %v1939_v36  ;;  %v1532_v36 = vld [vmem:[%s2086_s7 + $0x18] sm:$0xff] }
 0xf5a   :  { %1221 = vmatpush.bf16.msrb.mxu0 %v1532_v36 }
 0xf5b   :  { %v1142_v48 = vsel %vm127_vm12, %v1138_v47, 0.0 }
 0xf5c   :  { %1143 = vadd.xlane.f32.xlu0 %v1142_v48 }
 0xf5e   :  { %1222 = vmatpush.bf16.msrb.mxu0 %v1531_v61 }
 0xfc7   :  { %v1141_v49 = vpop.xlane.xlu1 %1140 }
 0xfc8   :  { %v1145_v50 = vmul.f32 %v1141_v49, %v1767_v34 }
 0xfca   :  { %v1147_v51 = vsub.f32 %v1137_v44, %v1145_v50 }
 0xfcc   :  { %v1149_v52 = vmul.f32 %v1147_v51, %v1147_v51 }
 0xfce   :  { %v1151_v53 = vsel %vm127_vm12, %v1149_v52, 0.0 }
 0xfcf   :  { %v1144_v54 = vpop.xlane.xlu0 %1143  ;;  %1152 = vadd.xlane.f32.xlu2 %v1151_v53 }
 0xfd0   :  { %v1146_v35 = vmul.f32 %v1144_v54, %v1767_v34 }
 0xfd2   :  { %v1148_v55 = vsub.f32 %v1138_v47, %v1146_v35 }
 0xfd4   :  { %v1150_v56 = vmul.f32 %v1148_v55, %v1148_v55 }
 0xfd6   :  { %v1154_v57 = vsel %vm127_vm12, %v1150_v56, 0.0 }
 0xfd7   :  { %1155 = vadd.xlane.f32.xlu1 %v1154_v57 }
0x1042   :  { %v1153_v58 = vpop.xlane.xlu2 %1152 }
0x1043   :  { %v1157_v59 = vmul.f32 %v1153_v58, %v1767_v34 }
0x1045   :  { %v1159_v60 = vadd.f32 1e-12, %v1157_v59 }
0x1047   :  { %1612 = vrsqrt.f32 %v1159_v60  ;;  %vm1167_vm6 = vweird.f32 %v1159_v60 }
0x104a   :  { %v1156_v62 = vpop.xlane.xlu1 %1155 }
0x104b   :  { %v1158_v63 = vmul.f32 %v1156_v62, %v1767_v34 }
0x104d   :  { %v1613_v1 = vpop.eup %1612  ;;  %v1160_v2 = vadd.f32 1e-12, %v1158_v63 }
0x104e   :  { %v1162_v24 = vmul.f32 %v1613_v1, %v1159_v60  ;;  %vm1168_vm5 = vweird.f32 %v1613_v1 }
0x104f   :  { %1614 = vrsqrt.f32 %v1160_v2  ;;  %vm1169_vm11 = vmor %vm1167_vm6, %vm1168_vm5  ;;  %vm1177_vm9 = vweird.f32 %v1160_v2 }
0x1050   :  { %v1163_v3 = vmul.f32 %v1613_v1, %v1162_v24 }
0x1052   :  { %v1164_v4 = vmul.f32 0.5, %v1163_v3 }
0x1054   :  { %v1165_v5 = vsub.f32 1.5, %v1164_v4 }
0x1055   :  { %v1615_v6 = vpop.eup %1614 }
0x1056   :  { %v1166_v7 = vmul.f32 %v1613_v1, %v1165_v5  ;;  %v1172_v8 = vmul.f32 %v1615_v6, %v1160_v2  ;;  %vm1178_vm8 = vweird.f32 %v1615_v6 }
0x1057   :  { %vm1179_vm10 = vmor %vm1177_vm9, %vm1178_vm8 }
0x1058   :  { %v1173_v11 = vmul.f32 %v1615_v6, %v1172_v8  ;;  %v1170_v0 = vsel %vm1169_vm11, %v1613_v1, %v1166_v7 }
0x1059   :  { %v1181_v16 = vmul.f32 %v1170_v0, %v1147_v51 }
0x105a   :  { %v1174_v12 = vmul.f32 0.5, %v1173_v11 }
0x105b   :  { %v1184_v19 = vmul.f32 %v1183_v14, %v1181_v16 }
0x105c   :  { %v1175_v13 = vsub.f32 1.5, %v1174_v12 }
0x105d   :  { %v1187_v26 = vadd.f32 %v1186_v21, %v1184_v19 }
0x105e   :  { %v1176_v17 = vmul.f32 %v1615_v6, %v1175_v13 }
0x1060   :  { %v1180_v20 = vsel %vm1179_vm10, %v1615_v6, %v1176_v17 }
0x1061   :  { %v1182_v22 = vmul.f32 %v1180_v20, %v1148_v55  ;;  %v1257_v55 = vperm.slane %v2021_v41, 5 }
0x1063   :  { %v1185_v25 = vmul.f32 %v1183_v14, %v1182_v22 }
0x1065   :  { %v1188_v27 = vadd.f32 %v1186_v21, %v1185_v25 }
0x1067   :  { %v1189_v29 = vpack.c.bf16 %v1188_v27, %v1187_v26 }
0x1069   :  { %1491 = vmatmul.msk.bf16.vlgmr.msrb.gmra.mxu0 %vm127_vm12, %v1189_v29  ;;  %v1345_v29 = vperm.slane %v2021_v41, 2 }
0x10e6   :  { %v1224_v37 = vpop.f32.mrf.mxu0 }
0x10e7   :  { %v1225_v38 = vadd.f32 %v1561_v33, %v1224_v37 }
0x10e9   :  { %v1229_v15 = vmul.f32 %v1225_v38, %v1225_v38 }
0x10eb   :  { %v1231_v39 = vmul.f32 %v1229_v15, %v1225_v38 }
0x10ed   :  { %v1233_v28 = vmul.f32 0.044715, %v1231_v39 }
0x10ee   :  { %v1226_v18 = vpop.f32.mrf.mxu0 }
0x10ef   :  { %v1235_v40 = vadd.f32 %v1233_v28, %v1225_v38  ;;  %v1227_v42 = vadd.f32 %v1561_v33, %v1226_v18 }
0x10f1   :  { %v1237_v9 = vmul.f32 0.7978846, %v1235_v40  ;;  %v1230_v43 = vmul.f32 %v1227_v42, %v1227_v42 }
0x10f3   :  { %v1232_v44 = vmul.f32 %v1230_v43, %v1227_v42  ;;  %1616 = vtanh.f32 %v1237_v9 }
0x10f5   :  { %v1234_v45 = vmul.f32 0.044715, %v1232_v44 }
0x10f7   :  { %v1236_v10 = vadd.f32 %v1234_v45, %v1227_v42  ;;  %v1364_v45 = vstv %s2091_s12 }
0x10f9   :  { %v1238_v46 = vmul.f32 0.7978846, %v1236_v10  ;;  %v1617_v47 = vpop.eup %1616 }
0x10fa   :  { %v1241_v48 = vadd.f32 1.0, %v1617_v47 }
0x10fb   :  { %1618 = vtanh.f32 %v1238_v46 }
0x10fc   :  { %v1243_v50 = vmul.f32 0.5, %v1241_v48 }
0x10fe   :  { %v1245_v53 = vmul.f32 %v1243_v50, %v1225_v38  ;;  %v1351_v38 = vld [vmem:[%s2090_s11] sm:$0x1]  ;;  %s1663_s11 = smov [#allocation4]  }
0x10ff   :  { %s1374_s30 = sshll.u32 %s1663_s11, 4  ;;  %s1375_s30 = int_to_ptr.vmem [resolvable:$true] %s1374_s30 }
0x1101   :  { %v1619_v49 = vpop.eup %1618 }
0x1102   :  { %v1242_v51 = vadd.f32 1.0, %v1619_v49 }
0x1104   :  { %v1244_v52 = vmul.f32 0.5, %v1242_v51 }
0x1106   :  { %v1246_v54 = vmul.f32 %v1244_v52, %v1227_v42 }
0x1108   :  { %v1247_v35 = vpack.c.bf16 %v1246_v54, %v1245_v53 }
0x110a   :  { %1516 = vmatmul.msk.bf16.vlgmr.msra.gmra.mxu3 %vm699_vm4, %v1247_v35 }
0x118d   :  { %v1294_v56 = vpop.f32.mrf.mxu3 }
0x118e   :  { %v1295_v57 = vadd.f32 %v1294_v56, %v1257_v55 }
0x1190   :  { %v1299_v36 = vadd.f32 %v1295_v57, %v1187_v26 }
0x1192   :  { %v1301_v58 = vsel %vm127_vm12, %v1299_v36, 0.0 }
0x1193   :  { %1302 = vadd.xlane.f32.xlu0 %v1301_v58 }
0x1195   :  { %v1296_v59 = vpop.f32.mrf.mxu3 }
0x1196   :  { %v1297_v60 = vadd.f32 %v1296_v59, %v1257_v55 }
0x1198   :  { %v1300_v61 = vadd.f32 %v1297_v60, %v1188_v27 }
0x119a   :  { %v1304_v62 = vsel %vm127_vm12, %v1300_v61, 0.0 }
0x119b   :  { %1305 = vadd.xlane.f32.xlu2 %v1304_v62 }
0x1206   :  { %v1303_v63 = vpop.xlane.xlu0 %1302 }
0x1207   :  { %v1307_v1 = vmul.f32 %v1303_v63, %v1767_v34 }
0x1209   :  { %v1309_v2 = vsub.f32 %v1299_v36, %v1307_v1 }
0x120b   :  { %v1311_v24 = vmul.f32 %v1309_v2, %v1309_v2 }
0x120d   :  { %v1313_v3 = vsel %vm127_vm12, %v1311_v24, 0.0 }
0x120e   :  { %v1306_v4 = vpop.xlane.xlu2 %1305  ;;  %1314 = vadd.xlane.f32.xlu1 %v1313_v3 }
0x120f   :  { %v1308_v5 = vmul.f32 %v1306_v4, %v1767_v34 }
0x1211   :  { %v1310_v6 = vsub.f32 %v1300_v61, %v1308_v5 }
0x1213   :  { %v1312_v7 = vmul.f32 %v1310_v6, %v1310_v6 }
0x1215   :  { %v1316_v8 = vsel %vm127_vm12, %v1312_v7, 0.0 }
0x1216   :  { %1317 = vadd.xlane.f32.xlu0 %v1316_v8 }
0x1281   :  { %v1315_v11 = vpop.xlane.xlu1 %1314 }
0x1282   :  { %v1319_v0 = vmul.f32 %v1315_v11, %v1767_v34 }
0x1284   :  { %v1321_v12 = vadd.f32 1e-12, %v1319_v0 }
0x1286   :  { %1620 = vrsqrt.f32 %v1321_v12  ;;  %vm1329_vm12 = vweird.f32 %v1321_v12 }
0x1289   :  { %v1318_v13 = vpop.xlane.xlu0 %1317 }
0x128a   :  { %v1320_v14 = vmul.f32 %v1318_v13, %v1767_v34  ;;  %v1348_v34 = vperm.slane %v2021_v41, 3 }
0x128c   :  { %v1621_v16 = vpop.eup %1620  ;;  %v1322_v17 = vadd.f32 1e-12, %v1320_v14 }
0x128d   :  { %v1324_v20 = vmul.f32 %v1621_v16, %v1321_v12  ;;  %vm1330_vm4 = vweird.f32 %v1621_v16 }
0x128e   :  { %1622 = vrsqrt.f32 %v1322_v17  ;;  %vm1331_vm13 = vmor %vm1329_vm12, %vm1330_vm4  ;;  %vm1339_vm15 = vweird.f32 %v1322_v17 }
0x128f   :  { %v1325_v21 = vmul.f32 %v1621_v16, %v1324_v20 }
0x1291   :  { %v1326_v19 = vmul.f32 0.5, %v1325_v21 }
0x1293   :  { %v1327_v22 = vsub.f32 1.5, %v1326_v19 }
0x1294   :  { %v1623_v25 = vpop.eup %1622 }
0x1295   :  { %v1328_v26 = vmul.f32 %v1621_v16, %v1327_v22  ;;  %v1334_v27 = vmul.f32 %v1623_v25, %v1322_v17  ;;  %vm1340_vm14 = vweird.f32 %v1623_v25 }
0x1296   :  { %vm1341_vm2 = vmor %vm1339_vm15, %vm1340_vm14 }
0x1297   :  { %v1332_v30 = vsel %vm1331_vm13, %v1621_v16, %v1328_v26  ;;  %v1335_v31 = vmul.f32 %v1623_v25, %v1334_v27 }
0x1298   :  { %v1343_v32 = vmul.f32 %v1332_v30, %v1309_v2 }
0x1299   :  { %v1336_v33 = vmul.f32 0.5, %v1335_v31 }
0x129a   :  { %v1346_v37 = vmul.f32 %v1345_v29, %v1343_v32 }
0x129b   :  { %v1337_v23 = vsub.f32 1.5, %v1336_v33 }
0x129c   :  { %v1349_v15 = vadd.f32 %v1348_v34, %v1346_v37 }
0x129d   :  { %v1338_v39 = vmul.f32 %v1623_v25, %v1337_v23 }
0x129e   :  { %v1352_v28 = vmul.f32 %v1351_v38, %v1349_v15 }
0x129f   :  { %v1342_v18 = vsel %vm1341_vm2, %v1623_v25, %v1338_v39 }
0x12a0   :  { %v1354_v40 = vsel %vm1353_vm1, %v1352_v28, 0.0  ;;  %v1344_v42 = vmul.f32 %v1342_v18, %v1310_v6 }
0x12a1   :  { %1355 = vadd.xlane.f32.xlu2 %v1354_v40 }
0x12a2   :  { %v1347_v9 = vmul.f32 %v1345_v29, %v1344_v42 }
0x12a4   :  { %v1350_v41 = vadd.f32 %v1348_v34, %v1347_v9 }
0x12a6   :  { %v1357_v43 = vmul.f32 %v1351_v38, %v1350_v41 }
0x12a8   :  { %v1358_v44 = vsel %vm1353_vm1, %v1357_v43, 0.0 }
0x12a9   :  { %1359 = vadd.xlane.f32.xlu1 %v1358_v44 }
0x1314   :  { %v1356_v10 = vpop.xlane.xlu2 %1355 }
0x131c   :  { %v1360_v46 = vpop.xlane.xlu1 %1359 }
0x131d   :  { %v1362_v47 = vsel %vm1361_vm3, %v1356_v10, %v1360_v46 }
0x131e   :  { %v1365_v48 = vadd.f32 %v1364_v45, %v1362_v47 }
0x1320   :  { %1624 = vtanh.f32 %v1365_v48 }
0x1326   :  { %v1625_v49 = vpop.eup %1624 }
0x1327   :  { %1368 = vst.msk [vmem:[#allocation4] sm:$0x1] %vm1367_vm7, %v1625_v49 }
0x1328   :  { %1379 = dma.vmem_to_hbm [thread:$0]  %s1375_s30, 16, %s1377_s15, [#allocation5]  }
0x1329   :  { %1650 = dma.done.wait [#allocation5], 16  }
0x132a   :  { %1651 = vsyncadd [#allocation5], 4294967280 }
0x132b   :  { %1384 = vsyncpa [#allocation5], 1 }

</bundles_post_ra>
